<compile_context>
chip_gen: v7x
topology: tpu7x:2x2x1
jax: 0.10.0
libtpu: 0.0.40
codegen_flags: <defaults>
</compile_context>

<pallas_src>
import functools

import jax
import jax.numpy as jnp
from jax.experimental import pallas as pl
from jax.experimental.pallas import tpu as pltpu


def _lstm_net_kernel(x_ref,       # (T*B, I)  bf16, time-major rows
                     wih0_ref,    # (I, 4H)   bf16, g-gate cols pre-doubled
                     b0_ref,      # (1, 4H)   f32,  g-gate lanes pre-doubled
                     wstep_ref,   # (2H, 8H)  bf16, [[whh0, wih1],[0, whh1]], g cols doubled
                     b1_ref,      # (1, 4H)   f32,  g-gate lanes pre-doubled
                     wlin_ref,    # (1, H)    f32
                     blin_ref,    # (1, 1)    f32
                     out_ref,     # (B, T)    f32, rows = batch, cols = time
                     *, T, B, H):
    f32 = jnp.float32

    # ---- Loop-invariant loads / broadcasts (hoisted out of the recurrence).
    wstep = wstep_ref[...]                                   # bf16 MXU operand
    b1_full = jnp.broadcast_to(b1_ref[...], (B, 4 * H))      # hoisted broadcast
    w_row = wlin_ref[...]                                    # (1, H) f32
    col = jax.lax.broadcasted_iota(jnp.int32, (B, T), 1)     # output column ids

    # ---- Layer-0 input->hidden gates for ALL timesteps in one MXU pass.
    gx0 = (jnp.dot(x_ref[...], wih0_ref[...],
                   preferred_element_type=f32)
           + b0_ref[...])                                    # (T*B, 4H) f32

    def gates_to_hc(g, c_prev):
        # Single EUP pass over the full (B, 4H) gate vector.  The 2H:3H lanes
        # arrive pre-scaled by 2, so tanh(x) = 2*sigmoid(2x) - 1 is recovered
        # with a cheap VALU fixup instead of a second transcendental pass.
        s = jax.nn.sigmoid(g)
        i = s[:, 0 * H:1 * H]
        f = s[:, 1 * H:2 * H]
        gg = 2.0 * s[:, 2 * H:3 * H] - 1.0
        o = s[:, 3 * H:4 * H]
        c_new = f * c_prev + i * gg
        h_new = o * jnp.tanh(c_new)
        return h_new, c_new

    zeros = jnp.zeros((B, H), f32)
    c0, c1, h1 = zeros, zeros, zeros
    rec0 = jnp.zeros((B, 4 * H), f32)      # h0(-1) @ whh0 == 0
    out_acc = jnp.zeros((B, T), f32)

    for t in range(T):                     # fully unrolled, small static trip count
        # Layer 0: precomputed input part + recurrent part from the previous
        # step's fused matmul.
        g0 = gx0[t * B:(t + 1) * B, :] + rec0
        h0, c0 = gates_to_hc(g0, c0)

        # ONE fused MXU push per step (bf16 operands, f32 accumulate).
        xh = jnp.concatenate([h0, h1], axis=1).astype(jnp.bfloat16)   # (B, 2H)
        fused = jnp.dot(xh, wstep, preferred_element_type=f32)        # (B, 8H)
        rec0 = fused[:, 0:4 * H]
        g1 = fused[:, 4 * H:8 * H] + b1_full
        h1, c1 = gates_to_hc(g1, c1)

        # Final Linear (n_class=1) as VPU multiply + lane reduce; dropout is
        # identity at eval.  Off the serial recurrence chain.
        o_t = jnp.sum(h1 * w_row, axis=-1, keepdims=True)             # (B, 1)
        out_acc = jnp.where(col == t, o_t, out_acc)

    out_ref[...] = out_acc + blin_ref[...]


def net_forward(x, params):
    """x: (B, T, I) float32.  Returns (B*T, n_class) like the PyTorch module."""
    B, T, I = x.shape
    H = params["whh0"].shape[0]
    n_class = params["wlin"].shape[1]
    # TODO(synk): kernel emits the final Linear as a lane reduction; n_class>1
    # would need a small MXU matmul in the epilogue instead.
    assert n_class == 1

    # Pre-scale the g-gate (2H:3H) columns by 2 so the kernel can use the
    # tanh(x) = 2*sigmoid(2x) - 1 identity with a single transcendental pass.
    def scale_g(w):
        return w.at[..., 2 * H:3 * H].multiply(2.0)

    wih0 = scale_g(params["wih0"])
    whh0 = scale_g(params["whh0"])
    wih1 = scale_g(params["wih1"])
    whh1 = scale_g(params["whh1"])
    b0 = scale_g(params["b0"])
    b1 = scale_g(params["b1"])

    # Fused per-step RHS:  W = [[whh0, wih1], [0, whh1]]   (2H, 8H)
    wstep = jnp.concatenate(
        [jnp.concatenate([whh0, wih1], axis=1),
         jnp.concatenate([jnp.zeros_like(whh1), whh1], axis=1)], axis=0)

    bf16 = jnp.bfloat16
    # bf16 MXU operands only; biases / gate math / final linear stay f32.
    x_tm = jnp.transpose(x, (1, 0, 2)).reshape(T * B, I).astype(bf16)
    wih0 = wih0.astype(bf16)
    wstep = wstep.astype(bf16)
    w_row = params["wlin"].T.astype(jnp.float32)           # (1, H)

    vmem = pl.BlockSpec(memory_space=pltpu.MemorySpace.VMEM)
    operands = (x_tm, wih0, b0, wstep, b1, w_row, params["blin"])

    out_bt = pl.pallas_call(
        functools.partial(_lstm_net_kernel, T=T, B=B, H=H),
        out_shape=jax.ShapeDtypeStruct((B, T), jnp.float32),
        in_specs=[vmem] * len(operands),
        out_specs=vmem,
    )(*operands)

    # Rows already batch-major: element (b, t) -> row b*T + t, like PyTorch's
    # out.reshape(-1, H) followed by the Linear.
    return out_bt.reshape(B * T, n_class)


def init_params(key, input_size, hidden_dim, n_class=1):
    """Deterministic LSTM/linear params (PyTorch-style uniform init ranges)."""
    k = 1.0 / jnp.sqrt(hidden_dim)
    keys = jax.random.split(key, 10)

    def u(kk, shape):
        return jax.random.uniform(kk, shape, jnp.float32, -k, k)

    # Weights stored pre-transposed: (in_features, 4*hidden); gate order i,f,g,o.
    return {
        "wih0": u(keys[0], (input_size, 4 * hidden_dim)),
        "whh0": u(keys[1], (hidden_dim, 4 * hidden_dim)),
        "b0":   u(keys[2], (1, 4 * hidden_dim)) + u(keys[3], (1, 4 * hidden_dim)),
        "wih1": u(keys[4], (hidden_dim, 4 * hidden_dim)),
        "whh1": u(keys[5], (hidden_dim, 4 * hidden_dim)),
        "b1":   u(keys[6], (1, 4 * hidden_dim)) + u(keys[7], (1, 4 * hidden_dim)),
        "wlin": u(keys[8], (hidden_dim, n_class)),
        "blin": u(keys[9], (1, n_class)),
    }


def net_forward_ref(x, params, matmul_dtype=jnp.float32):
    """Pure-JAX reference of the same forward pass.

    matmul_dtype=jnp.float32  -> PyTorch/f32 semantics.
    matmul_dtype=jnp.bfloat16 -> same MXU operand precision as the kernel
                                 (final Linear stays f32, like the kernel).
    """
    B, T, I = x.shape
    H = params["whh0"].shape[0]

    def mm(a, b):
        return jnp.dot(a.astype(matmul_dtype), b.astype(matmul_dtype),
                       preferred_element_type=jnp.float32)

    def cell(x_t, h, c, wih, whh, b):
        g = mm(x_t, wih) + mm(h, whh) + b
        i = jax.nn.sigmoid(g[:, 0 * H:1 * H])
        f = jax.nn.sigmoid(g[:, 1 * H:2 * H])
        gg = jnp.tanh(g[:, 2 * H:3 * H])
        o = jax.nn.sigmoid(g[:, 3 * H:4 * H])
        c = f * c + i * gg
        h = o * jnp.tanh(c)
        return h, c

    h0 = jnp.zeros((B, H)); c0 = jnp.zeros((B, H))
    h1 = jnp.zeros((B, H)); c1 = jnp.zeros((B, H))
    outs = []
    for t in range(T):
        h0, c0 = cell(x[:, t, :], h0, c0,
                      params["wih0"], params["whh0"], params["b0"])
        h1, c1 = cell(h0, h1, c1,
                      params["wih1"], params["whh1"], params["b1"])
        outs.append(h1)
    seq = jnp.stack(outs, axis=1)                    # (B, T, H)
    flat = seq.reshape(-1, H)                        # dropout = identity (eval)
    return flat @ params["wlin"] + params["blin"]    # final Linear in f32


if __name__ == "__main__":
    B, T, input_size, hidden_dim, n_class = 8, 8, 16, 32, 1

    key = jax.random.PRNGKey(0)
    k_x, k_p = jax.random.split(key)
    x = jax.random.normal(k_x, (B, T, input_size), jnp.float32)
    params = init_params(k_p, input_size, hidden_dim, n_class)

    out = jax.jit(net_forward)(x, params)
    out = jax.block_until_ready(out)
    assert out.shape == (B * T, n_class), out.shape

    # Strict logic check: reference with the SAME MXU operand precision (bf16);
    # remaining differences are only the tanh-from-sigmoid identity and matmul
    # fusion/reassociation (~1e-6).
    ref_bf16 = net_forward_ref(x, params, matmul_dtype=jnp.bfloat16)
    err_bf = float(jnp.max(jnp.abs(out - ref_bf16)))
    assert jnp.allclose(out, ref_bf16, atol=1e-3, rtol=1e-3), err_bf

    # Semantic sanity check vs the pure-f32 reference (PyTorch semantics);
    # differences are bounded by bf16 MXU-operand rounding.
    ref_f32 = net_forward_ref(x, params)
    err_f32 = float(jnp.max(jnp.abs(out - ref_f32)))
    assert jnp.allclose(out, ref_f32, atol=5e-2, rtol=5e-2), err_f32

    print("KERNEL_OK")
</pallas_src>

<mosaic_0001>
module attributes {stable_mosaic.version = 11 : i64} {
  func.func @_lstm_net_kernel(%arg0: memref<64x16xbf16, #tpu.memory_space<vmem>>, %arg1: memref<16x128xbf16, #tpu.memory_space<vmem>>, %arg2: memref<1x128xf32, #tpu.memory_space<vmem>>, %arg3: memref<64x256xbf16, #tpu.memory_space<vmem>>, %arg4: memref<1x128xf32, #tpu.memory_space<vmem>>, %arg5: memref<1x32xf32, #tpu.memory_space<vmem>>, %arg6: memref<1x1xf32, #tpu.memory_space<vmem>>, %arg7: memref<8x8xf32, #tpu.memory_space<vmem>>) attributes {dimension_semantics = [], scalar_prefetch = 0 : i64, scratch_operands = 0 : i64, tpu.core_type = #tpu.core_type<tc>} {
    %c0 = arith.constant 0 : index
    %c0_0 = arith.constant 0 : index
    %0 = vector.load %arg3[%c0, %c0_0] : memref<64x256xbf16, #tpu.memory_space<vmem>>, vector<64x256xbf16>
    %c0_1 = arith.constant 0 : index
    %c0_2 = arith.constant 0 : index
    %1 = vector.load %arg4[%c0_1, %c0_2] : memref<1x128xf32, #tpu.memory_space<vmem>>, vector<1x128xf32>
    %2 = vector.shape_cast %1 : vector<1x128xf32> to vector<1x128xf32>
    %3 = vector.broadcast %2 : vector<1x128xf32> to vector<8x128xf32>
    %c0_3 = arith.constant 0 : index
    %c0_4 = arith.constant 0 : index
    %4 = vector.load %arg5[%c0_3, %c0_4] : memref<1x32xf32, #tpu.memory_space<vmem>>, vector<1x32xf32>
    %5 = tpu.iota {dimensions = array<i32: 1>} : vector<8x8xi32>
    %c0_5 = arith.constant 0 : index
    %c0_6 = arith.constant 0 : index
    %6 = vector.load %arg0[%c0_5, %c0_6] : memref<64x16xbf16, #tpu.memory_space<vmem>>, vector<64x16xbf16>
    %c0_7 = arith.constant 0 : index
    %c0_8 = arith.constant 0 : index
    %7 = vector.load %arg1[%c0_7, %c0_8] : memref<16x128xbf16, #tpu.memory_space<vmem>>, vector<16x128xbf16>
    %cst = arith.constant dense<0.000000e+00> : vector<64x128xf32>
    %8 = tpu.matmul %6, %7, %cst {dimension_numbers = #tpu.dot_dimension_numbers<[1], [0], [0], [1], [0, 0, 1, 1], [], []>} : vector<64x16xbf16>, vector<16x128xbf16>, vector<64x128xf32> -> vector<64x128xf32>
    %c0_9 = arith.constant 0 : index
    %c0_10 = arith.constant 0 : index
    %9 = vector.load %arg2[%c0_9, %c0_10] : memref<1x128xf32, #tpu.memory_space<vmem>>, vector<1x128xf32>
    %10 = vector.broadcast %9 : vector<1x128xf32> to vector<64x128xf32>
    %11 = arith.addf %8, %10 : vector<64x128xf32>
    %cst_11 = arith.constant 0.000000e+00 : f32
    %12 = vector.broadcast %cst_11 : f32 to vector<8x32xf32>
    %cst_12 = arith.constant 0.000000e+00 : f32
    %13 = vector.broadcast %cst_12 : f32 to vector<8x128xf32>
    %cst_13 = arith.constant 0.000000e+00 : f32
    %14 = vector.broadcast %cst_13 : f32 to vector<8x8xf32>
    %15 = vector.extract_strided_slice %11 {offsets = [0, 0], sizes = [8, 128], strides = [1, 1]} : vector<64x128xf32> to vector<8x128xf32>
    %16 = arith.addf %15, %13 : vector<8x128xf32>
    %17 = arith.negf %16 : vector<8x128xf32>
    %18 = math.exp %17 : vector<8x128xf32>
    %cst_14 = arith.constant 1.000000e+00 : f32
    %19 = vector.broadcast %cst_14 : f32 to vector<8x128xf32>
    %20 = arith.addf %19, %18 : vector<8x128xf32>
    %21 = arith.divf %19, %20 : vector<8x128xf32>
    %22 = vector.extract_strided_slice %21 {offsets = [0, 0], sizes = [8, 32], strides = [1, 1]} : vector<8x128xf32> to vector<8x32xf32>
    %23 = vector.extract_strided_slice %21 {offsets = [0, 32], sizes = [8, 32], strides = [1, 1]} : vector<8x128xf32> to vector<8x32xf32>
    %24 = vector.extract_strided_slice %21 {offsets = [0, 64], sizes = [8, 32], strides = [1, 1]} : vector<8x128xf32> to vector<8x32xf32>
    %cst_15 = arith.constant 2.000000e+00 : f32
    %25 = vector.broadcast %cst_15 : f32 to vector<8x32xf32>
    %26 = arith.mulf %25, %24 : vector<8x32xf32>
    %cst_16 = arith.constant 1.000000e+00 : f32
    %27 = vector.broadcast %cst_16 : f32 to vector<8x32xf32>
    %28 = arith.subf %26, %27 : vector<8x32xf32>
    %29 = vector.extract_strided_slice %21 {offsets = [0, 96], sizes = [8, 32], strides = [1, 1]} : vector<8x128xf32> to vector<8x32xf32>
    %30 = arith.mulf %23, %12 : vector<8x32xf32>
    %31 = arith.mulf %22, %28 : vector<8x32xf32>
    %32 = arith.addf %30, %31 : vector<8x32xf32>
    %33 = math.tanh %32 : vector<8x32xf32>
    %34 = arith.mulf %29, %33 : vector<8x32xf32>
    %35 = tpu.concatenate %34, %12 in 1 : vector<8x32xf32>, vector<8x32xf32> -> vector<8x64xf32>
    %36 = arith.truncf %35 : vector<8x64xf32> to vector<8x64xbf16>
    %cst_17 = arith.constant dense<0.000000e+00> : vector<8x256xf32>
    %37 = tpu.matmul %36, %0, %cst_17 {dimension_numbers = #tpu.dot_dimension_numbers<[1], [0], [0], [1], [0, 0, 1, 1], [], []>} : vector<8x64xbf16>, vector<64x256xbf16>, vector<8x256xf32> -> vector<8x256xf32>
    %38 = vector.extract_strided_slice %37 {offsets = [0, 0], sizes = [8, 128], strides = [1, 1]} : vector<8x256xf32> to vector<8x128xf32>
    %39 = vector.extract_strided_slice %37 {offsets = [0, 128], sizes = [8, 128], strides = [1, 1]} : vector<8x256xf32> to vector<8x128xf32>
    %40 = arith.addf %39, %3 : vector<8x128xf32>
    %41 = arith.negf %40 : vector<8x128xf32>
    %42 = math.exp %41 : vector<8x128xf32>
    %cst_18 = arith.constant 1.000000e+00 : f32
    %43 = vector.broadcast %cst_18 : f32 to vector<8x128xf32>
    %44 = arith.addf %43, %42 : vector<8x128xf32>
    %45 = arith.divf %43, %44 : vector<8x128xf32>
    %46 = vector.extract_strided_slice %45 {offsets = [0, 0], sizes = [8, 32], strides = [1, 1]} : vector<8x128xf32> to vector<8x32xf32>
    %47 = vector.extract_strided_slice %45 {offsets = [0, 32], sizes = [8, 32], strides = [1, 1]} : vector<8x128xf32> to vector<8x32xf32>
    %48 = vector.extract_strided_slice %45 {offsets = [0, 64], sizes = [8, 32], strides = [1, 1]} : vector<8x128xf32> to vector<8x32xf32>
    %cst_19 = arith.constant 2.000000e+00 : f32
    %49 = vector.broadcast %cst_19 : f32 to vector<8x32xf32>
    %50 = arith.mulf %49, %48 : vector<8x32xf32>
    %cst_20 = arith.constant 1.000000e+00 : f32
    %51 = vector.broadcast %cst_20 : f32 to vector<8x32xf32>
    %52 = arith.subf %50, %51 : vector<8x32xf32>
    %53 = vector.extract_strided_slice %45 {offsets = [0, 96], sizes = [8, 32], strides = [1, 1]} : vector<8x128xf32> to vector<8x32xf32>
    %54 = arith.mulf %47, %12 : vector<8x32xf32>
    %55 = arith.mulf %46, %52 : vector<8x32xf32>
    %56 = arith.addf %54, %55 : vector<8x32xf32>
    %57 = math.tanh %56 : vector<8x32xf32>
    %58 = arith.mulf %53, %57 : vector<8x32xf32>
    %59 = vector.broadcast %4 : vector<1x32xf32> to vector<8x32xf32>
    %60 = arith.mulf %58, %59 : vector<8x32xf32>
    %cst_21 = arith.constant dense<0.000000e+00> : vector<8xf32>
    %61 = vector.multi_reduction <add>, %60, %cst_21 [1] : vector<8x32xf32> to vector<8xf32>
    %62 = vector.shape_cast %61 : vector<8xf32> to vector<8x1xf32>
    %c0_i32 = arith.constant 0 : i32
    %63 = vector.broadcast %c0_i32 : i32 to vector<8x8xi32>
    %64 = arith.cmpi eq, %5, %63 : vector<8x8xi32>
    %65 = vector.shape_cast %62 : vector<8x1xf32> to vector<8x1xf32>
    %66 = vector.broadcast %65 : vector<8x1xf32> to vector<8x8xf32>
    %67 = arith.select %64, %66, %14 : vector<8x8xi1>, vector<8x8xf32>
    %68 = vector.extract_strided_slice %11 {offsets = [8, 0], sizes = [8, 128], strides = [1, 1]} : vector<64x128xf32> to vector<8x128xf32>
    %69 = arith.addf %68, %38 : vector<8x128xf32>
    %70 = arith.negf %69 : vector<8x128xf32>
    %71 = math.exp %70 : vector<8x128xf32>
    %cst_22 = arith.constant 1.000000e+00 : f32
    %72 = vector.broadcast %cst_22 : f32 to vector<8x128xf32>
    %73 = arith.addf %72, %71 : vector<8x128xf32>
    %74 = arith.divf %72, %73 : vector<8x128xf32>
    %75 = vector.extract_strided_slice %74 {offsets = [0, 0], sizes = [8, 32], strides = [1, 1]} : vector<8x128xf32> to vector<8x32xf32>
    %76 = vector.extract_strided_slice %74 {offsets = [0, 32], sizes = [8, 32], strides = [1, 1]} : vector<8x128xf32> to vector<8x32xf32>
    %77 = vector.extract_strided_slice %74 {offsets = [0, 64], sizes = [8, 32], strides = [1, 1]} : vector<8x128xf32> to vector<8x32xf32>
    %cst_23 = arith.constant 2.000000e+00 : f32
    %78 = vector.broadcast %cst_23 : f32 to vector<8x32xf32>
    %79 = arith.mulf %78, %77 : vector<8x32xf32>
    %cst_24 = arith.constant 1.000000e+00 : f32
    %80 = vector.broadcast %cst_24 : f32 to vector<8x32xf32>
    %81 = arith.subf %79, %80 : vector<8x32xf32>
    %82 = vector.extract_strided_slice %74 {offsets = [0, 96], sizes = [8, 32], strides = [1, 1]} : vector<8x128xf32> to vector<8x32xf32>
    %83 = arith.mulf %76, %32 : vector<8x32xf32>
    %84 = arith.mulf %75, %81 : vector<8x32xf32>
    %85 = arith.addf %83, %84 : vector<8x32xf32>
    %86 = math.tanh %85 : vector<8x32xf32>
    %87 = arith.mulf %82, %86 : vector<8x32xf32>
    %88 = tpu.concatenate %87, %58 in 1 : vector<8x32xf32>, vector<8x32xf32> -> vector<8x64xf32>
    %89 = arith.truncf %88 : vector<8x64xf32> to vector<8x64xbf16>
    %cst_25 = arith.constant dense<0.000000e+00> : vector<8x256xf32>
    %90 = tpu.matmul %89, %0, %cst_25 {dimension_numbers = #tpu.dot_dimension_numbers<[1], [0], [0], [1], [0, 0, 1, 1], [], []>} : vector<8x64xbf16>, vector<64x256xbf16>, vector<8x256xf32> -> vector<8x256xf32>
    %91 = vector.extract_strided_slice %90 {offsets = [0, 0], sizes = [8, 128], strides = [1, 1]} : vector<8x256xf32> to vector<8x128xf32>
    %92 = vector.extract_strided_slice %90 {offsets = [0, 128], sizes = [8, 128], strides = [1, 1]} : vector<8x256xf32> to vector<8x128xf32>
    %93 = arith.addf %92, %3 : vector<8x128xf32>
    %94 = arith.negf %93 : vector<8x128xf32>
    %95 = math.exp %94 : vector<8x128xf32>
    %cst_26 = arith.constant 1.000000e+00 : f32
    %96 = vector.broadcast %cst_26 : f32 to vector<8x128xf32>
    %97 = arith.addf %96, %95 : vector<8x128xf32>
    %98 = arith.divf %96, %97 : vector<8x128xf32>
    %99 = vector.extract_strided_slice %98 {offsets = [0, 0], sizes = [8, 32], strides = [1, 1]} : vector<8x128xf32> to vector<8x32xf32>
    %100 = vector.extract_strided_slice %98 {offsets = [0, 32], sizes = [8, 32], strides = [1, 1]} : vector<8x128xf32> to vector<8x32xf32>
    %101 = vector.extract_strided_slice %98 {offsets = [0, 64], sizes = [8, 32], strides = [1, 1]} : vector<8x128xf32> to vector<8x32xf32>
    %cst_27 = arith.constant 2.000000e+00 : f32
    %102 = vector.broadcast %cst_27 : f32 to vector<8x32xf32>
    %103 = arith.mulf %102, %101 : vector<8x32xf32>
    %cst_28 = arith.constant 1.000000e+00 : f32
    %104 = vector.broadcast %cst_28 : f32 to vector<8x32xf32>
    %105 = arith.subf %103, %104 : vector<8x32xf32>
    %106 = vector.extract_strided_slice %98 {offsets = [0, 96], sizes = [8, 32], strides = [1, 1]} : vector<8x128xf32> to vector<8x32xf32>
    %107 = arith.mulf %100, %56 : vector<8x32xf32>
    %108 = arith.mulf %99, %105 : vector<8x32xf32>
    %109 = arith.addf %107, %108 : vector<8x32xf32>
    %110 = math.tanh %109 : vector<8x32xf32>
    %111 = arith.mulf %106, %110 : vector<8x32xf32>
    %112 = vector.broadcast %4 : vector<1x32xf32> to vector<8x32xf32>
    %113 = arith.mulf %111, %112 : vector<8x32xf32>
    %cst_29 = arith.constant dense<0.000000e+00> : vector<8xf32>
    %114 = vector.multi_reduction <add>, %113, %cst_29 [1] : vector<8x32xf32> to vector<8xf32>
    %115 = vector.shape_cast %114 : vector<8xf32> to vector<8x1xf32>
    %c1_i32 = arith.constant 1 : i32
    %116 = vector.broadcast %c1_i32 : i32 to vector<8x8xi32>
    %117 = arith.cmpi eq, %5, %116 : vector<8x8xi32>
    %118 = vector.shape_cast %115 : vector<8x1xf32> to vector<8x1xf32>
    %119 = vector.broadcast %118 : vector<8x1xf32> to vector<8x8xf32>
    %120 = arith.select %117, %119, %67 : vector<8x8xi1>, vector<8x8xf32>
    %121 = vector.extract_strided_slice %11 {offsets = [16, 0], sizes = [8, 128], strides = [1, 1]} : vector<64x128xf32> to vector<8x128xf32>
    %122 = arith.addf %121, %91 : vector<8x128xf32>
    %123 = arith.negf %122 : vector<8x128xf32>
    %124 = math.exp %123 : vector<8x128xf32>
    %cst_30 = arith.constant 1.000000e+00 : f32
    %125 = vector.broadcast %cst_30 : f32 to vector<8x128xf32>
    %126 = arith.addf %125, %124 : vector<8x128xf32>
    %127 = arith.divf %125, %126 : vector<8x128xf32>
    %128 = vector.extract_strided_slice %127 {offsets = [0, 0], sizes = [8, 32], strides = [1, 1]} : vector<8x128xf32> to vector<8x32xf32>
    %129 = vector.extract_strided_slice %127 {offsets = [0, 32], sizes = [8, 32], strides = [1, 1]} : vector<8x128xf32> to vector<8x32xf32>
    %130 = vector.extract_strided_slice %127 {offsets = [0, 64], sizes = [8, 32], strides = [1, 1]} : vector<8x128xf32> to vector<8x32xf32>
    %cst_31 = arith.constant 2.000000e+00 : f32
    %131 = vector.broadcast %cst_31 : f32 to vector<8x32xf32>
    %132 = arith.mulf %131, %130 : vector<8x32xf32>
    %cst_32 = arith.constant 1.000000e+00 : f32
    %133 = vector.broadcast %cst_32 : f32 to vector<8x32xf32>
    %134 = arith.subf %132, %133 : vector<8x32xf32>
    %135 = vector.extract_strided_slice %127 {offsets = [0, 96], sizes = [8, 32], strides = [1, 1]} : vector<8x128xf32> to vector<8x32xf32>
    %136 = arith.mulf %129, %85 : vector<8x32xf32>
    %137 = arith.mulf %128, %134 : vector<8x32xf32>
    %138 = arith.addf %136, %137 : vector<8x32xf32>
    %139 = math.tanh %138 : vector<8x32xf32>
    %140 = arith.mulf %135, %139 : vector<8x32xf32>
    %141 = tpu.concatenate %140, %111 in 1 : vector<8x32xf32>, vector<8x32xf32> -> vector<8x64xf32>
    %142 = arith.truncf %141 : vector<8x64xf32> to vector<8x64xbf16>
    %cst_33 = arith.constant dense<0.000000e+00> : vector<8x256xf32>
    %143 = tpu.matmul %142, %0, %cst_33 {dimension_numbers = #tpu.dot_dimension_numbers<[1], [0], [0], [1], [0, 0, 1, 1], [], []>} : vector<8x64xbf16>, vector<64x256xbf16>, vector<8x256xf32> -> vector<8x256xf32>
    %144 = vector.extract_strided_slice %143 {offsets = [0, 0], sizes = [8, 128], strides = [1, 1]} : vector<8x256xf32> to vector<8x128xf32>
    %145 = vector.extract_strided_slice %143 {offsets = [0, 128], sizes = [8, 128], strides = [1, 1]} : vector<8x256xf32> to vector<8x128xf32>
    %146 = arith.addf %145, %3 : vector<8x128xf32>
    %147 = arith.negf %146 : vector<8x128xf32>
    %148 = math.exp %147 : vector<8x128xf32>
    %cst_34 = arith.constant 1.000000e+00 : f32
    %149 = vector.broadcast %cst_34 : f32 to vector<8x128xf32>
    %150 = arith.addf %149, %148 : vector<8x128xf32>
    %151 = arith.divf %149, %150 : vector<8x128xf32>
    %152 = vector.extract_strided_slice %151 {offsets = [0, 0], sizes = [8, 32], strides = [1, 1]} : vector<8x128xf32> to vector<8x32xf32>
    %153 = vector.extract_strided_slice %151 {offsets = [0, 32], sizes = [8, 32], strides = [1, 1]} : vector<8x128xf32> to vector<8x32xf32>
    %154 = vector.extract_strided_slice %151 {offsets = [0, 64], sizes = [8, 32], strides = [1, 1]} : vector<8x128xf32> to vector<8x32xf32>
    %cst_35 = arith.constant 2.000000e+00 : f32
    %155 = vector.broadcast %cst_35 : f32 to vector<8x32xf32>
    %156 = arith.mulf %155, %154 : vector<8x32xf32>
    %cst_36 = arith.constant 1.000000e+00 : f32
    %157 = vector.broadcast %cst_36 : f32 to vector<8x32xf32>
    %158 = arith.subf %156, %157 : vector<8x32xf32>
    %159 = vector.extract_strided_slice %151 {offsets = [0, 96], sizes = [8, 32], strides = [1, 1]} : vector<8x128xf32> to vector<8x32xf32>
    %160 = arith.mulf %153, %109 : vector<8x32xf32>
    %161 = arith.mulf %152, %158 : vector<8x32xf32>
    %162 = arith.addf %160, %161 : vector<8x32xf32>
    %163 = math.tanh %162 : vector<8x32xf32>
    %164 = arith.mulf %159, %163 : vector<8x32xf32>
    %165 = vector.broadcast %4 : vector<1x32xf32> to vector<8x32xf32>
    %166 = arith.mulf %164, %165 : vector<8x32xf32>
    %cst_37 = arith.constant dense<0.000000e+00> : vector<8xf32>
    %167 = vector.multi_reduction <add>, %166, %cst_37 [1] : vector<8x32xf32> to vector<8xf32>
    %168 = vector.shape_cast %167 : vector<8xf32> to vector<8x1xf32>
    %c2_i32 = arith.constant 2 : i32
    %169 = vector.broadcast %c2_i32 : i32 to vector<8x8xi32>
    %170 = arith.cmpi eq, %5, %169 : vector<8x8xi32>
    %171 = vector.shape_cast %168 : vector<8x1xf32> to vector<8x1xf32>
    %172 = vector.broadcast %171 : vector<8x1xf32> to vector<8x8xf32>
    %173 = arith.select %170, %172, %120 : vector<8x8xi1>, vector<8x8xf32>
    %174 = vector.extract_strided_slice %11 {offsets = [24, 0], sizes = [8, 128], strides = [1, 1]} : vector<64x128xf32> to vector<8x128xf32>
    %175 = arith.addf %174, %144 : vector<8x128xf32>
    %176 = arith.negf %175 : vector<8x128xf32>
    %177 = math.exp %176 : vector<8x128xf32>
    %cst_38 = arith.constant 1.000000e+00 : f32
    %178 = vector.broadcast %cst_38 : f32 to vector<8x128xf32>
    %179 = arith.addf %178, %177 : vector<8x128xf32>
    %180 = arith.divf %178, %179 : vector<8x128xf32>
    %181 = vector.extract_strided_slice %180 {offsets = [0, 0], sizes = [8, 32], strides = [1, 1]} : vector<8x128xf32> to vector<8x32xf32>
    %182 = vector.extract_strided_slice %180 {offsets = [0, 32], sizes = [8, 32], strides = [1, 1]} : vector<8x128xf32> to vector<8x32xf32>
    %183 = vector.extract_strided_slice %180 {offsets = [0, 64], sizes = [8, 32], strides = [1, 1]} : vector<8x128xf32> to vector<8x32xf32>
    %cst_39 = arith.constant 2.000000e+00 : f32
    %184 = vector.broadcast %cst_39 : f32 to vector<8x32xf32>
    %185 = arith.mulf %184, %183 : vector<8x32xf32>
    %cst_40 = arith.constant 1.000000e+00 : f32
    %186 = vector.broadcast %cst_40 : f32 to vector<8x32xf32>
    %187 = arith.subf %185, %186 : vector<8x32xf32>
    %188 = vector.extract_strided_slice %180 {offsets = [0, 96], sizes = [8, 32], strides = [1, 1]} : vector<8x128xf32> to vector<8x32xf32>
    %189 = arith.mulf %182, %138 : vector<8x32xf32>
    %190 = arith.mulf %181, %187 : vector<8x32xf32>
    %191 = arith.addf %189, %190 : vector<8x32xf32>
    %192 = math.tanh %191 : vector<8x32xf32>
    %193 = arith.mulf %188, %192 : vector<8x32xf32>
    %194 = tpu.concatenate %193, %164 in 1 : vector<8x32xf32>, vector<8x32xf32> -> vector<8x64xf32>
    %195 = arith.truncf %194 : vector<8x64xf32> to vector<8x64xbf16>
    %cst_41 = arith.constant dense<0.000000e+00> : vector<8x256xf32>
    %196 = tpu.matmul %195, %0, %cst_41 {dimension_numbers = #tpu.dot_dimension_numbers<[1], [0], [0], [1], [0, 0, 1, 1], [], []>} : vector<8x64xbf16>, vector<64x256xbf16>, vector<8x256xf32> -> vector<8x256xf32>
    %197 = vector.extract_strided_slice %196 {offsets = [0, 0], sizes = [8, 128], strides = [1, 1]} : vector<8x256xf32> to vector<8x128xf32>
    %198 = vector.extract_strided_slice %196 {offsets = [0, 128], sizes = [8, 128], strides = [1, 1]} : vector<8x256xf32> to vector<8x128xf32>
    %199 = arith.addf %198, %3 : vector<8x128xf32>
    %200 = arith.negf %199 : vector<8x128xf32>
    %201 = math.exp %200 : vector<8x128xf32>
    %cst_42 = arith.constant 1.000000e+00 : f32
    %202 = vector.broadcast %cst_42 : f32 to vector<8x128xf32>
    %203 = arith.addf %202, %201 : vector<8x128xf32>
    %204 = arith.divf %202, %203 : vector<8x128xf32>
    %205 = vector.extract_strided_slice %204 {offsets = [0, 0], sizes = [8, 32], strides = [1, 1]} : vector<8x128xf32> to vector<8x32xf32>
    %206 = vector.extract_strided_slice %204 {offsets = [0, 32], sizes = [8, 32], strides = [1, 1]} : vector<8x128xf32> to vector<8x32xf32>
    %207 = vector.extract_strided_slice %204 {offsets = [0, 64], sizes = [8, 32], strides = [1, 1]} : vector<8x128xf32> to vector<8x32xf32>
    %cst_43 = arith.constant 2.000000e+00 : f32
    %208 = vector.broadcast %cst_43 : f32 to vector<8x32xf32>
    %209 = arith.mulf %208, %207 : vector<8x32xf32>
    %cst_44 = arith.constant 1.000000e+00 : f32
    %210 = vector.broadcast %cst_44 : f32 to vector<8x32xf32>
    %211 = arith.subf %209, %210 : vector<8x32xf32>
    %212 = vector.extract_strided_slice %204 {offsets = [0, 96], sizes = [8, 32], strides = [1, 1]} : vector<8x128xf32> to vector<8x32xf32>
    %213 = arith.mulf %206, %162 : vector<8x32xf32>
    %214 = arith.mulf %205, %211 : vector<8x32xf32>
    %215 = arith.addf %213, %214 : vector<8x32xf32>
    %216 = math.tanh %215 : vector<8x32xf32>
    %217 = arith.mulf %212, %216 : vector<8x32xf32>
    %218 = vector.broadcast %4 : vector<1x32xf32> to vector<8x32xf32>
    %219 = arith.mulf %217, %218 : vector<8x32xf32>
    %cst_45 = arith.constant dense<0.000000e+00> : vector<8xf32>
    %220 = vector.multi_reduction <add>, %219, %cst_45 [1] : vector<8x32xf32> to vector<8xf32>
    %221 = vector.shape_cast %220 : vector<8xf32> to vector<8x1xf32>
    %c3_i32 = arith.constant 3 : i32
    %222 = vector.broadcast %c3_i32 : i32 to vector<8x8xi32>
    %223 = arith.cmpi eq, %5, %222 : vector<8x8xi32>
    %224 = vector.shape_cast %221 : vector<8x1xf32> to vector<8x1xf32>
    %225 = vector.broadcast %224 : vector<8x1xf32> to vector<8x8xf32>
    %226 = arith.select %223, %225, %173 : vector<8x8xi1>, vector<8x8xf32>
    %227 = vector.extract_strided_slice %11 {offsets = [32, 0], sizes = [8, 128], strides = [1, 1]} : vector<64x128xf32> to vector<8x128xf32>
    %228 = arith.addf %227, %197 : vector<8x128xf32>
    %229 = arith.negf %228 : vector<8x128xf32>
    %230 = math.exp %229 : vector<8x128xf32>
    %cst_46 = arith.constant 1.000000e+00 : f32
    %231 = vector.broadcast %cst_46 : f32 to vector<8x128xf32>
    %232 = arith.addf %231, %230 : vector<8x128xf32>
    %233 = arith.divf %231, %232 : vector<8x128xf32>
    %234 = vector.extract_strided_slice %233 {offsets = [0, 0], sizes = [8, 32], strides = [1, 1]} : vector<8x128xf32> to vector<8x32xf32>
    %235 = vector.extract_strided_slice %233 {offsets = [0, 32], sizes = [8, 32], strides = [1, 1]} : vector<8x128xf32> to vector<8x32xf32>
    %236 = vector.extract_strided_slice %233 {offsets = [0, 64], sizes = [8, 32], strides = [1, 1]} : vector<8x128xf32> to vector<8x32xf32>
    %cst_47 = arith.constant 2.000000e+00 : f32
    %237 = vector.broadcast %cst_47 : f32 to vector<8x32xf32>
    %238 = arith.mulf %237, %236 : vector<8x32xf32>
    %cst_48 = arith.constant 1.000000e+00 : f32
    %239 = vector.broadcast %cst_48 : f32 to vector<8x32xf32>
    %240 = arith.subf %238, %239 : vector<8x32xf32>
    %241 = vector.extract_strided_slice %233 {offsets = [0, 96], sizes = [8, 32], strides = [1, 1]} : vector<8x128xf32> to vector<8x32xf32>
    %242 = arith.mulf %235, %191 : vector<8x32xf32>
    %243 = arith.mulf %234, %240 : vector<8x32xf32>
    %244 = arith.addf %242, %243 : vector<8x32xf32>
    %245 = math.tanh %244 : vector<8x32xf32>
    %246 = arith.mulf %241, %245 : vector<8x32xf32>
    %247 = tpu.concatenate %246, %217 in 1 : vector<8x32xf32>, vector<8x32xf32> -> vector<8x64xf32>
    %248 = arith.truncf %247 : vector<8x64xf32> to vector<8x64xbf16>
    %cst_49 = arith.constant dense<0.000000e+00> : vector<8x256xf32>
    %249 = tpu.matmul %248, %0, %cst_49 {dimension_numbers = #tpu.dot_dimension_numbers<[1], [0], [0], [1], [0, 0, 1, 1], [], []>} : vector<8x64xbf16>, vector<64x256xbf16>, vector<8x256xf32> -> vector<8x256xf32>
    %250 = vector.extract_strided_slice %249 {offsets = [0, 0], sizes = [8, 128], strides = [1, 1]} : vector<8x256xf32> to vector<8x128xf32>
    %251 = vector.extract_strided_slice %249 {offsets = [0, 128], sizes = [8, 128], strides = [1, 1]} : vector<8x256xf32> to vector<8x128xf32>
    %252 = arith.addf %251, %3 : vector<8x128xf32>
    %253 = arith.negf %252 : vector<8x128xf32>
    %254 = math.exp %253 : vector<8x128xf32>
    %cst_50 = arith.constant 1.000000e+00 : f32
    %255 = vector.broadcast %cst_50 : f32 to vector<8x128xf32>
    %256 = arith.addf %255, %254 : vector<8x128xf32>
    %257 = arith.divf %255, %256 : vector<8x128xf32>
    %258 = vector.extract_strided_slice %257 {offsets = [0, 0], sizes = [8, 32], strides = [1, 1]} : vector<8x128xf32> to vector<8x32xf32>
    %259 = vector.extract_strided_slice %257 {offsets = [0, 32], sizes = [8, 32], strides = [1, 1]} : vector<8x128xf32> to vector<8x32xf32>
    %260 = vector.extract_strided_slice %257 {offsets = [0, 64], sizes = [8, 32], strides = [1, 1]} : vector<8x128xf32> to vector<8x32xf32>
    %cst_51 = arith.constant 2.000000e+00 : f32
    %261 = vector.broadcast %cst_51 : f32 to vector<8x32xf32>
    %262 = arith.mulf %261, %260 : vector<8x32xf32>
    %cst_52 = arith.constant 1.000000e+00 : f32
    %263 = vector.broadcast %cst_52 : f32 to vector<8x32xf32>
    %264 = arith.subf %262, %263 : vector<8x32xf32>
    %265 = vector.extract_strided_slice %257 {offsets = [0, 96], sizes = [8, 32], strides = [1, 1]} : vector<8x128xf32> to vector<8x32xf32>
    %266 = arith.mulf %259, %215 : vector<8x32xf32>
    %267 = arith.mulf %258, %264 : vector<8x32xf32>
    %268 = arith.addf %266, %267 : vector<8x32xf32>
    %269 = math.tanh %268 : vector<8x32xf32>
    %270 = arith.mulf %265, %269 : vector<8x32xf32>
    %271 = vector.broadcast %4 : vector<1x32xf32> to vector<8x32xf32>
    %272 = arith.mulf %270, %271 : vector<8x32xf32>
    %cst_53 = arith.constant dense<0.000000e+00> : vector<8xf32>
    %273 = vector.multi_reduction <add>, %272, %cst_53 [1] : vector<8x32xf32> to vector<8xf32>
    %274 = vector.shape_cast %273 : vector<8xf32> to vector<8x1xf32>
    %c4_i32 = arith.constant 4 : i32
    %275 = vector.broadcast %c4_i32 : i32 to vector<8x8xi32>
    %276 = arith.cmpi eq, %5, %275 : vector<8x8xi32>
    %277 = vector.shape_cast %274 : vector<8x1xf32> to vector<8x1xf32>
    %278 = vector.broadcast %277 : vector<8x1xf32> to vector<8x8xf32>
    %279 = arith.select %276, %278, %226 : vector<8x8xi1>, vector<8x8xf32>
    %280 = vector.extract_strided_slice %11 {offsets = [40, 0], sizes = [8, 128], strides = [1, 1]} : vector<64x128xf32> to vector<8x128xf32>
    %281 = arith.addf %280, %250 : vector<8x128xf32>
    %282 = arith.negf %281 : vector<8x128xf32>
    %283 = math.exp %282 : vector<8x128xf32>
    %cst_54 = arith.constant 1.000000e+00 : f32
    %284 = vector.broadcast %cst_54 : f32 to vector<8x128xf32>
    %285 = arith.addf %284, %283 : vector<8x128xf32>
    %286 = arith.divf %284, %285 : vector<8x128xf32>
    %287 = vector.extract_strided_slice %286 {offsets = [0, 0], sizes = [8, 32], strides = [1, 1]} : vector<8x128xf32> to vector<8x32xf32>
    %288 = vector.extract_strided_slice %286 {offsets = [0, 32], sizes = [8, 32], strides = [1, 1]} : vector<8x128xf32> to vector<8x32xf32>
    %289 = vector.extract_strided_slice %286 {offsets = [0, 64], sizes = [8, 32], strides = [1, 1]} : vector<8x128xf32> to vector<8x32xf32>
    %cst_55 = arith.constant 2.000000e+00 : f32
    %290 = vector.broadcast %cst_55 : f32 to vector<8x32xf32>
    %291 = arith.mulf %290, %289 : vector<8x32xf32>
    %cst_56 = arith.constant 1.000000e+00 : f32
    %292 = vector.broadcast %cst_56 : f32 to vector<8x32xf32>
    %293 = arith.subf %291, %292 : vector<8x32xf32>
    %294 = vector.extract_strided_slice %286 {offsets = [0, 96], sizes = [8, 32], strides = [1, 1]} : vector<8x128xf32> to vector<8x32xf32>
    %295 = arith.mulf %288, %244 : vector<8x32xf32>
    %296 = arith.mulf %287, %293 : vector<8x32xf32>
    %297 = arith.addf %295, %296 : vector<8x32xf32>
    %298 = math.tanh %297 : vector<8x32xf32>
    %299 = arith.mulf %294, %298 : vector<8x32xf32>
    %300 = tpu.concatenate %299, %270 in 1 : vector<8x32xf32>, vector<8x32xf32> -> vector<8x64xf32>
    %301 = arith.truncf %300 : vector<8x64xf32> to vector<8x64xbf16>
    %cst_57 = arith.constant dense<0.000000e+00> : vector<8x256xf32>
    %302 = tpu.matmul %301, %0, %cst_57 {dimension_numbers = #tpu.dot_dimension_numbers<[1], [0], [0], [1], [0, 0, 1, 1], [], []>} : vector<8x64xbf16>, vector<64x256xbf16>, vector<8x256xf32> -> vector<8x256xf32>
    %303 = vector.extract_strided_slice %302 {offsets = [0, 0], sizes = [8, 128], strides = [1, 1]} : vector<8x256xf32> to vector<8x128xf32>
    %304 = vector.extract_strided_slice %302 {offsets = [0, 128], sizes = [8, 128], strides = [1, 1]} : vector<8x256xf32> to vector<8x128xf32>
    %305 = arith.addf %304, %3 : vector<8x128xf32>
    %306 = arith.negf %305 : vector<8x128xf32>
    %307 = math.exp %306 : vector<8x128xf32>
    %cst_58 = arith.constant 1.000000e+00 : f32
    %308 = vector.broadcast %cst_58 : f32 to vector<8x128xf32>
    %309 = arith.addf %308, %307 : vector<8x128xf32>
    %310 = arith.divf %308, %309 : vector<8x128xf32>
    %311 = vector.extract_strided_slice %310 {offsets = [0, 0], sizes = [8, 32], strides = [1, 1]} : vector<8x128xf32> to vector<8x32xf32>
    %312 = vector.extract_strided_slice %310 {offsets = [0, 32], sizes = [8, 32], strides = [1, 1]} : vector<8x128xf32> to vector<8x32xf32>
    %313 = vector.extract_strided_slice %310 {offsets = [0, 64], sizes = [8, 32], strides = [1, 1]} : vector<8x128xf32> to vector<8x32xf32>
    %cst_59 = arith.constant 2.000000e+00 : f32
    %314 = vector.broadcast %cst_59 : f32 to vector<8x32xf32>
    %315 = arith.mulf %314, %313 : vector<8x32xf32>
    %cst_60 = arith.constant 1.000000e+00 : f32
    %316 = vector.broadcast %cst_60 : f32 to vector<8x32xf32>
    %317 = arith.subf %315, %316 : vector<8x32xf32>
    %318 = vector.extract_strided_slice %310 {offsets = [0, 96], sizes = [8, 32], strides = [1, 1]} : vector<8x128xf32> to vector<8x32xf32>
    %319 = arith.mulf %312, %268 : vector<8x32xf32>
    %320 = arith.mulf %311, %317 : vector<8x32xf32>
    %321 = arith.addf %319, %320 : vector<8x32xf32>
    %322 = math.tanh %321 : vector<8x32xf32>
    %323 = arith.mulf %318, %322 : vector<8x32xf32>
    %324 = vector.broadcast %4 : vector<1x32xf32> to vector<8x32xf32>
    %325 = arith.mulf %323, %324 : vector<8x32xf32>
    %cst_61 = arith.constant dense<0.000000e+00> : vector<8xf32>
    %326 = vector.multi_reduction <add>, %325, %cst_61 [1] : vector<8x32xf32> to vector<8xf32>
    %327 = vector.shape_cast %326 : vector<8xf32> to vector<8x1xf32>
    %c5_i32 = arith.constant 5 : i32
    %328 = vector.broadcast %c5_i32 : i32 to vector<8x8xi32>
    %329 = arith.cmpi eq, %5, %328 : vector<8x8xi32>
    %330 = vector.shape_cast %327 : vector<8x1xf32> to vector<8x1xf32>
    %331 = vector.broadcast %330 : vector<8x1xf32> to vector<8x8xf32>
    %332 = arith.select %329, %331, %279 : vector<8x8xi1>, vector<8x8xf32>
    %333 = vector.extract_strided_slice %11 {offsets = [48, 0], sizes = [8, 128], strides = [1, 1]} : vector<64x128xf32> to vector<8x128xf32>
    %334 = arith.addf %333, %303 : vector<8x128xf32>
    %335 = arith.negf %334 : vector<8x128xf32>
    %336 = math.exp %335 : vector<8x128xf32>
    %cst_62 = arith.constant 1.000000e+00 : f32
    %337 = vector.broadcast %cst_62 : f32 to vector<8x128xf32>
    %338 = arith.addf %337, %336 : vector<8x128xf32>
    %339 = arith.divf %337, %338 : vector<8x128xf32>
    %340 = vector.extract_strided_slice %339 {offsets = [0, 0], sizes = [8, 32], strides = [1, 1]} : vector<8x128xf32> to vector<8x32xf32>
    %341 = vector.extract_strided_slice %339 {offsets = [0, 32], sizes = [8, 32], strides = [1, 1]} : vector<8x128xf32> to vector<8x32xf32>
    %342 = vector.extract_strided_slice %339 {offsets = [0, 64], sizes = [8, 32], strides = [1, 1]} : vector<8x128xf32> to vector<8x32xf32>
    %cst_63 = arith.constant 2.000000e+00 : f32
    %343 = vector.broadcast %cst_63 : f32 to vector<8x32xf32>
    %344 = arith.mulf %343, %342 : vector<8x32xf32>
    %cst_64 = arith.constant 1.000000e+00 : f32
    %345 = vector.broadcast %cst_64 : f32 to vector<8x32xf32>
    %346 = arith.subf %344, %345 : vector<8x32xf32>
    %347 = vector.extract_strided_slice %339 {offsets = [0, 96], sizes = [8, 32], strides = [1, 1]} : vector<8x128xf32> to vector<8x32xf32>
    %348 = arith.mulf %341, %297 : vector<8x32xf32>
    %349 = arith.mulf %340, %346 : vector<8x32xf32>
    %350 = arith.addf %348, %349 : vector<8x32xf32>
    %351 = math.tanh %350 : vector<8x32xf32>
    %352 = arith.mulf %347, %351 : vector<8x32xf32>
    %353 = tpu.concatenate %352, %323 in 1 : vector<8x32xf32>, vector<8x32xf32> -> vector<8x64xf32>
    %354 = arith.truncf %353 : vector<8x64xf32> to vector<8x64xbf16>
    %cst_65 = arith.constant dense<0.000000e+00> : vector<8x256xf32>
    %355 = tpu.matmul %354, %0, %cst_65 {dimension_numbers = #tpu.dot_dimension_numbers<[1], [0], [0], [1], [0, 0, 1, 1], [], []>} : vector<8x64xbf16>, vector<64x256xbf16>, vector<8x256xf32> -> vector<8x256xf32>
    %356 = vector.extract_strided_slice %355 {offsets = [0, 0], sizes = [8, 128], strides = [1, 1]} : vector<8x256xf32> to vector<8x128xf32>
    %357 = vector.extract_strided_slice %355 {offsets = [0, 128], sizes = [8, 128], strides = [1, 1]} : vector<8x256xf32> to vector<8x128xf32>
    %358 = arith.addf %357, %3 : vector<8x128xf32>
    %359 = arith.negf %358 : vector<8x128xf32>
    %360 = math.exp %359 : vector<8x128xf32>
    %cst_66 = arith.constant 1.000000e+00 : f32
    %361 = vector.broadcast %cst_66 : f32 to vector<8x128xf32>
    %362 = arith.addf %361, %360 : vector<8x128xf32>
    %363 = arith.divf %361, %362 : vector<8x128xf32>
    %364 = vector.extract_strided_slice %363 {offsets = [0, 0], sizes = [8, 32], strides = [1, 1]} : vector<8x128xf32> to vector<8x32xf32>
    %365 = vector.extract_strided_slice %363 {offsets = [0, 32], sizes = [8, 32], strides = [1, 1]} : vector<8x128xf32> to vector<8x32xf32>
    %366 = vector.extract_strided_slice %363 {offsets = [0, 64], sizes = [8, 32], strides = [1, 1]} : vector<8x128xf32> to vector<8x32xf32>
    %cst_67 = arith.constant 2.000000e+00 : f32
    %367 = vector.broadcast %cst_67 : f32 to vector<8x32xf32>
    %368 = arith.mulf %367, %366 : vector<8x32xf32>
    %cst_68 = arith.constant 1.000000e+00 : f32
    %369 = vector.broadcast %cst_68 : f32 to vector<8x32xf32>
    %370 = arith.subf %368, %369 : vector<8x32xf32>
    %371 = vector.extract_strided_slice %363 {offsets = [0, 96], sizes = [8, 32], strides = [1, 1]} : vector<8x128xf32> to vector<8x32xf32>
    %372 = arith.mulf %365, %321 : vector<8x32xf32>
    %373 = arith.mulf %364, %370 : vector<8x32xf32>
    %374 = arith.addf %372, %373 : vector<8x32xf32>
    %375 = math.tanh %374 : vector<8x32xf32>
    %376 = arith.mulf %371, %375 : vector<8x32xf32>
    %377 = vector.broadcast %4 : vector<1x32xf32> to vector<8x32xf32>
    %378 = arith.mulf %376, %377 : vector<8x32xf32>
    %cst_69 = arith.constant dense<0.000000e+00> : vector<8xf32>
    %379 = vector.multi_reduction <add>, %378, %cst_69 [1] : vector<8x32xf32> to vector<8xf32>
    %380 = vector.shape_cast %379 : vector<8xf32> to vector<8x1xf32>
    %c6_i32 = arith.constant 6 : i32
    %381 = vector.broadcast %c6_i32 : i32 to vector<8x8xi32>
    %382 = arith.cmpi eq, %5, %381 : vector<8x8xi32>
    %383 = vector.shape_cast %380 : vector<8x1xf32> to vector<8x1xf32>
    %384 = vector.broadcast %383 : vector<8x1xf32> to vector<8x8xf32>
    %385 = arith.select %382, %384, %332 : vector<8x8xi1>, vector<8x8xf32>
    %386 = vector.extract_strided_slice %11 {offsets = [56, 0], sizes = [8, 128], strides = [1, 1]} : vector<64x128xf32> to vector<8x128xf32>
    %387 = arith.addf %386, %356 : vector<8x128xf32>
    %388 = arith.negf %387 : vector<8x128xf32>
    %389 = math.exp %388 : vector<8x128xf32>
    %cst_70 = arith.constant 1.000000e+00 : f32
    %390 = vector.broadcast %cst_70 : f32 to vector<8x128xf32>
    %391 = arith.addf %390, %389 : vector<8x128xf32>
    %392 = arith.divf %390, %391 : vector<8x128xf32>
    %393 = vector.extract_strided_slice %392 {offsets = [0, 0], sizes = [8, 32], strides = [1, 1]} : vector<8x128xf32> to vector<8x32xf32>
    %394 = vector.extract_strided_slice %392 {offsets = [0, 32], sizes = [8, 32], strides = [1, 1]} : vector<8x128xf32> to vector<8x32xf32>
    %395 = vector.extract_strided_slice %392 {offsets = [0, 64], sizes = [8, 32], strides = [1, 1]} : vector<8x128xf32> to vector<8x32xf32>
    %cst_71 = arith.constant 2.000000e+00 : f32
    %396 = vector.broadcast %cst_71 : f32 to vector<8x32xf32>
    %397 = arith.mulf %396, %395 : vector<8x32xf32>
    %cst_72 = arith.constant 1.000000e+00 : f32
    %398 = vector.broadcast %cst_72 : f32 to vector<8x32xf32>
    %399 = arith.subf %397, %398 : vector<8x32xf32>
    %400 = vector.extract_strided_slice %392 {offsets = [0, 96], sizes = [8, 32], strides = [1, 1]} : vector<8x128xf32> to vector<8x32xf32>
    %401 = arith.mulf %394, %350 : vector<8x32xf32>
    %402 = arith.mulf %393, %399 : vector<8x32xf32>
    %403 = arith.addf %401, %402 : vector<8x32xf32>
    %404 = math.tanh %403 : vector<8x32xf32>
    %405 = arith.mulf %400, %404 : vector<8x32xf32>
    %406 = tpu.concatenate %405, %376 in 1 : vector<8x32xf32>, vector<8x32xf32> -> vector<8x64xf32>
    %407 = arith.truncf %406 : vector<8x64xf32> to vector<8x64xbf16>
    %cst_73 = arith.constant dense<0.000000e+00> : vector<8x256xf32>
    %408 = tpu.matmul %407, %0, %cst_73 {dimension_numbers = #tpu.dot_dimension_numbers<[1], [0], [0], [1], [0, 0, 1, 1], [], []>} : vector<8x64xbf16>, vector<64x256xbf16>, vector<8x256xf32> -> vector<8x256xf32>
    %409 = vector.extract_strided_slice %408 {offsets = [0, 128], sizes = [8, 128], strides = [1, 1]} : vector<8x256xf32> to vector<8x128xf32>
    %410 = arith.addf %409, %3 : vector<8x128xf32>
    %411 = arith.negf %410 : vector<8x128xf32>
    %412 = math.exp %411 : vector<8x128xf32>
    %cst_74 = arith.constant 1.000000e+00 : f32
    %413 = vector.broadcast %cst_74 : f32 to vector<8x128xf32>
    %414 = arith.addf %413, %412 : vector<8x128xf32>
    %415 = arith.divf %413, %414 : vector<8x128xf32>
    %416 = vector.extract_strided_slice %415 {offsets = [0, 0], sizes = [8, 32], strides = [1, 1]} : vector<8x128xf32> to vector<8x32xf32>
    %417 = vector.extract_strided_slice %415 {offsets = [0, 32], sizes = [8, 32], strides = [1, 1]} : vector<8x128xf32> to vector<8x32xf32>
    %418 = vector.extract_strided_slice %415 {offsets = [0, 64], sizes = [8, 32], strides = [1, 1]} : vector<8x128xf32> to vector<8x32xf32>
    %cst_75 = arith.constant 2.000000e+00 : f32
    %419 = vector.broadcast %cst_75 : f32 to vector<8x32xf32>
    %420 = arith.mulf %419, %418 : vector<8x32xf32>
    %cst_76 = arith.constant 1.000000e+00 : f32
    %421 = vector.broadcast %cst_76 : f32 to vector<8x32xf32>
    %422 = arith.subf %420, %421 : vector<8x32xf32>
    %423 = vector.extract_strided_slice %415 {offsets = [0, 96], sizes = [8, 32], strides = [1, 1]} : vector<8x128xf32> to vector<8x32xf32>
    %424 = arith.mulf %417, %374 : vector<8x32xf32>
    %425 = arith.mulf %416, %422 : vector<8x32xf32>
    %426 = arith.addf %424, %425 : vector<8x32xf32>
    %427 = math.tanh %426 : vector<8x32xf32>
    %428 = arith.mulf %423, %427 : vector<8x32xf32>
    %429 = vector.broadcast %4 : vector<1x32xf32> to vector<8x32xf32>
    %430 = arith.mulf %428, %429 : vector<8x32xf32>
    %cst_77 = arith.constant dense<0.000000e+00> : vector<8xf32>
    %431 = vector.multi_reduction <add>, %430, %cst_77 [1] : vector<8x32xf32> to vector<8xf32>
    %432 = vector.shape_cast %431 : vector<8xf32> to vector<8x1xf32>
    %c7_i32 = arith.constant 7 : i32
    %433 = vector.broadcast %c7_i32 : i32 to vector<8x8xi32>
    %434 = arith.cmpi eq, %5, %433 : vector<8x8xi32>
    %435 = vector.shape_cast %432 : vector<8x1xf32> to vector<8x1xf32>
    %436 = vector.broadcast %435 : vector<8x1xf32> to vector<8x8xf32>
    %437 = arith.select %434, %436, %385 : vector<8x8xi1>, vector<8x8xf32>
    %c0_78 = arith.constant 0 : index
    %c0_79 = arith.constant 0 : index
    %438 = vector.load %arg6[%c0_78, %c0_79] : memref<1x1xf32, #tpu.memory_space<vmem>>, vector<1x1xf32>
    %439 = vector.broadcast %438 : vector<1x1xf32> to vector<8x8xf32>
    %440 = arith.addf %437, %439 : vector<8x8xf32>
    %c0_80 = arith.constant 0 : index
    %c0_81 = arith.constant 0 : index
    %441 = vector.load %arg7[%c0_80, %c0_81] : memref<8x8xf32, #tpu.memory_space<vmem>>, vector<8x8xf32>
    tpu.vector_store %arg7[%c0_80, %c0_81], %440 {strides = array<i32>} : memref<8x8xf32, #tpu.memory_space<vmem>>, vector<8x8xf32>,
    return
  }
}

</mosaic_0001>

<bundles_post_ra>
// kernel: net_forward.1
= control target key start
LH: loop header
LB: loop body
LE: loop exit
PB: predicated region body
PF: predicated region fallthrough
CT: control target
= control target key end

     0   :  { %vm90_vm0 = vcmask 130048   ;;  %v1355_v29 = vmov 0   ;;  %vm198_vm1 = vcmask 261120   ;;  %vm241_vm2 = vcmask 523264   ;;  %s1356_s30 = smov 96   ;;  %s1721_s1 = inlined_call_operand.vmem [shape: bf16[16,128], index: 1, kind: input, shape index: {}]   ;;  %s1722_s0 = inlined_call_operand.vmem [shape: bf16[64,16], index: 0, kind: input, shape index: {}]   ;;  %s1723_s2 = inlined_call_operand.vmem [shape: f32[1,128], index: 2, kind: input, shape index: {}]   ;;  %s1724_s3 = inlined_call_operand.vmem [shape: bf16[64,256], index: 3, kind: input, shape index: {}]   ;;  %s1725_s4 = inlined_call_operand.vmem [shape: f32[1,128], index: 4, kind: input, shape index: {}]   ;;  %s1726_s5 = inlined_call_operand.vmem [shape: f32[1,32], index: 5, kind: input, shape index: {}]   ;;  %s1727_s6 = inlined_call_operand.<no memory space> [shape: f32[1,1], index: 6, kind: input, shape index: {}]   ;;  %s1728_s7 = inlined_call_operand.vmem [shape: f32[8,8], index: 7, kind: output, shape index: {}]  }
   0x1   :  { %v1240_v0 = vld [vmem:[%s1721_s1] sm:$0xff]   ;;  %v1242_v2 = vld [vmem:[%s1722_s0 + $0x8] sm:$0xff]   ;;  %s1353_s1 = smov 64   ;;  %v1439_v22 = vld [vmem:[%s1724_s3 + $0x14] ss:$8 sps:$4 sm:$0xff]   ;;  %277 = vmatprep.mubr.bf16.mxu1 %v1355_v29  ;;  %1238 = vset.pattern.permute.xlu1 %v1355_v29  ;;  %vm1152_vm11 = vcmask 64512  }
   0x2   :  { %v1241_v1 = vld [vmem:[%s1722_s0] sm:$0xff]   ;;  %1224 = vmatprep.subr.bf16.mxu0 %v1240_v0  ;;  %v1446_v23 = vld [vmem:[%s1724_s3 + $0x10] ss:$8 sps:$4 sm:$0xff]   ;;  %v1467_v26 = vld [vmem:[%s1724_s3 + $0x34] ss:$8 sps:$4 sm:$0xff]   ;;  %1239 = vset.pattern.permute.xlu0 %v1355_v29 }
   0x3   :  { %1225 = vmatpush3.bf16.msra.mxu0 %v1240_v0  ;;  %1226 = vmatprep.mubr.msk.bf16.mxu0 %vm90_vm0, %v1241_v1  ;;  %v1411_v3 = vld [vmem:[%s1723_s2] ss:$0 sm:$0xff]  ;;  %s1354_s2 = smov 32   ;;  %v1428_v20 = vld [vmem:[%s1724_s3 + $0x4] ss:$8 sps:$4 sm:$0xff]   ;;  %v1255_v1 = vld [vmem:[%s1722_s0 + $0x10] sm:$0xff]  }
   0x4   :  { %v1433_v21 = vld [vmem:[%s1724_s3] ss:$8 sps:$4 sm:$0xff]   ;;  %245 = vmatprep.subr.bf16.mxu1 %v1428_v20  ;;  %369 = vmatprep.subr.bf16.mxu0 %v1428_v20  ;;  %v1453_v24 = vld [vmem:[%s1724_s3 + $0x24] ss:$8 sps:$4 sm:$0xff]   ;;  %v1478_v28 = vld [vmem:[%s1724_s3 + $0x30] ss:$8 sps:$4 sm:$0xff]  }
   0x5   :  { %246 = vmatpush1.bf16.msra.mxu1 %v1433_v21  ;;  %v1460_v25 = vld [vmem:[%s1724_s3 + $0x20] ss:$8 sps:$4 sm:$0xff]  }
   0x6   :  { %1227 = vmatmul.mubr.msk.bf16.vlgmr.msra.gmra.mrb[0].mxu0 %vm90_vm0, %v1242_v2  ;;  %247 = vmatprep.subr.bf16.mxu1 %v1439_v22  ;;  %v1504_v36 = vld [vmem:[%s1725_s4] ss:$0 sm:$0xff]  ;;  %v1256_v2 = vld [vmem:[%s1722_s0 + $0x18] sm:$0xff]  }
   0x7   :  { %370 = vmatpush1.bf16.msra.mxu0 %v1433_v21  ;;  %1230 = vmatprep.mubr.msk.bf16.mxu0 %vm90_vm0, %v1255_v1 }
   0x8   :  { %371 = vmatprep.subr.bf16.mxu0 %v1439_v22 }
   0x9   :  { %248 = vmatpush1.bf16.msra.mxu1 %v1446_v23 }
   0xa   :  { %249 = vmatprep.subr.bf16.mxu1 %v1453_v24 }
   0xb   :  { %372 = vmatpush1.bf16.msra.mxu0 %v1446_v23 }
   0xc   :  { %373 = vmatprep.subr.bf16.mxu0 %v1453_v24 }
   0xd   :  { %250 = vmatpush1.bf16.msra.mxu1 %v1460_v25 }
   0xe   :  { %251 = vmatprep.subr.bf16.mxu1 %v1467_v26  ;;  %1231 = vmatmul.mubr.msk.bf16.gmra.mrb[4].mxu0 %vm90_vm0, %v1256_v2 }
   0xf   :  { %374 = vmatpush1.bf16.msra.mxu0 %v1460_v25  ;;  %401 = vmatprep.mubr.bf16.mxu0 %v1355_v29 }
  0x10   :  { %375 = vmatprep.subr.bf16.mxu0 %v1467_v26 }
  0x11   :  { %252 = vmatpush1.bf16.msra.mxu1 %v1478_v28 }
  0x12   :  { %485 = vmatprep.subr.bf16.mxu1 %v1428_v20 }
  0x13   :  { %376 = vmatpush1.bf16.msra.mxu0 %v1478_v28 }
  0x14   :  { %601 = vmatprep.subr.bf16.mxu0 %v1428_v20 }
  0xd9   :  { %v1413_v4 = vpop.f32.mrb[0].mxu0 }
  0xda   :  { %v137_v5 = vpop.f32.mrb[1].mxu0 }
  0xdb   :  { %v138_v6 = vadd.f32 %v1411_v3, %v137_v5  ;;  %v1416_v7 = vpop.f32.mrb[2].mxu0 }
  0xdc   :  { %v1418_v8 = vpop.f32.mrb[3].mxu0 }
  0xdd   :  { %v1169_v9 = vmul.f32 -1.442695, %v138_v6  ;;  %v141_v35 = vadd.f32 %v1411_v3, %v1418_v8 }
  0xdf   :  { %1257 = vpow2.f32 %v1169_v9 }
  0xe9   :  { %v1258_v10 = vpop.eup %1257 }
  0xea   :  { %v172_v11 = vadd.f32 1.0, %v1258_v10 }
  0xec   :  { %1259 = vrcp.f32 %v172_v11 }
  0xf6   :  { %v1260_v12 = vpop.eup %1259 }
  0xf7   :  { %v175_v13 = vmul.f32 2.0, %v1260_v12  ;;  %v177_v17 = vmul.f32 0.0, %v1260_v12 }
  0xf9   :  { %v1170_v14 = vadd.f32 -1.0, %v175_v13 }
  0xfb   :  { %179 = vrot.lane.b32.xlu0 %v1170_v14, %s1353_s1 }
 0x16d   :  { %v180_v15 = vpop.permute.xlu0 %179 }
 0x16e   :  { %v182_v16 = vmul.f32 %v1260_v12, %v180_v15 }
 0x170   :  { %184 = vrot.lane.b32.xlu0 %v182_v16, %s1354_s2 }
 0x1e2   :  { %v185_v18 = vpop.permute.xlu0 %184 }
 0x1e3   :  { %v1422_v19 = vadd.f32 %v185_v18, %v177_v17 }
 0x1e5   :  { %1261 = vtanh.f32 %v1422_v19 }
 0x1ef   :  { %v1262_v27 = vpop.eup %1261 }
 0x1f0   :  { %190 = vrot.lane.b32.xlu1 %v1262_v27, %s1353_s1  ;;  %v146_v27 = vadd.f32 %v1413_v4, %v1411_v3 }
 0x262   :  { %v191_v30 = vpop.permute.xlu1 %190 }
 0x263   :  { %v193_v31 = vmul.f32 %v1260_v12, %v191_v30  ;;  %v1534_v12 = vpop.f32.mrb[4].mxu0 }
 0x264   :  { %v1536_v13 = vpop.f32.mrb[5].mxu0 }
 0x265   :  { %195 = vrot.lane.b32.xlu1 %v193_v31, %s1354_s2  ;;  %v1538_v14 = vpop.f32.mrb[6].mxu0 }
 0x266   :  { %v1540_v15 = vpop.f32.mrb[7].mxu0 }
 0x2d7   :  { %v196_v32 = vpop.permute.xlu1 %195 }
 0x2d8   :  { %v199_v33 = vsel %vm198_vm1, %v196_v32, 0.0 }
 0x2d9   :  { %v200_v34 = vpack.c.bf16 %v199_v33, %v199_v33 }
 0x2db   :  { %1179 = vmatmul.mubr.msk.bf16.vlgmr.msra.gmra.mrb[0].mxu1 %vm241_vm2, %v200_v34 }
 0x2dc   :  { %486 = vmatpush1.bf16.msra.mxu1 %v1433_v21  ;;  %517 = vmatprep.mubr.bf16.mxu1 %v1355_v29 }
 0x2dd   :  { %487 = vmatprep.subr.bf16.mxu1 %v1439_v22 }
 0x2e0   :  { %488 = vmatpush1.bf16.msra.mxu1 %v1446_v23 }
 0x2e1   :  { %489 = vmatprep.subr.bf16.mxu1 %v1453_v24 }
 0x2e4   :  { %490 = vmatpush1.bf16.msra.mxu1 %v1460_v25 }
 0x2e5   :  { %491 = vmatprep.subr.bf16.mxu1 %v1467_v26 }
 0x2e8   :  { %492 = vmatpush1.bf16.msra.mxu1 %v1478_v28 }
 0x2e9   :  { %717 = vmatprep.subr.bf16.mxu1 %v1428_v20 }
 0x3ae   :  { %v279_v37 = vpop.f32.mrb[0].mxu1 }
 0x3af   :  { %v330_v38 = vadd.f32 %v279_v37, %v141_v35  ;;  %v281_v39 = vpop.f32.mrb[1].mxu1 }
 0x3b0   :  { %v286_v40 = vadd.f32 %v1504_v36, %v281_v39  ;;  %v283_v41 = vpop.f32.mrb[2].mxu1 }
 0x3b1   :  { %v1183_v42 = vmul.f32 -1.442695, %v330_v38  ;;  %v284_v43 = vpop.f32.mrb[3].mxu1 }
 0x3b2   :  { %v1180_v44 = vmul.f32 -1.442695, %v286_v40 }
 0x3b3   :  { %1263 = vpow2.f32 %v1183_v42 }
 0x3b4   :  { %1265 = vpow2.f32 %v1180_v44 }
 0x3bd   :  { %v1264_v45 = vpop.eup %1263 }
 0x3be   :  { %v1266_v46 = vpop.eup %1265  ;;  %v334_v47 = vadd.f32 1.0, %v1264_v45 }
 0x3bf   :  { %v290_v48 = vadd.f32 1.0, %v1266_v46 }
 0x3c0   :  { %1267 = vrcp.f32 %v334_v47 }
 0x3c1   :  { %1269 = vrcp.f32 %v290_v48 }
 0x3ca   :  { %v1268_v49 = vpop.eup %1267 }
 0x3cb   :  { %v1270_v50 = vpop.eup %1269  ;;  %v337_v51 = vmul.f32 2.0, %v1268_v49  ;;  %v339_v59 = vmul.f32 %v1268_v49, %v1422_v19 }
 0x3cc   :  { %v293_v52 = vmul.f32 2.0, %v1270_v50  ;;  %v295_v61 = vmul.f32 0.0, %v1270_v50 }
 0x3cd   :  { %v1184_v53 = vadd.f32 -1.0, %v337_v51 }
 0x3ce   :  { %v1181_v54 = vadd.f32 -1.0, %v293_v52 }
 0x3cf   :  { %341 = vrot.lane.b32.xlu1 %v1184_v53, %s1353_s1 }
 0x3d0   :  { %297 = vrot.lane.b32.xlu0 %v1181_v54, %s1353_s1 }
 0x441   :  { %v342_v55 = vpop.permute.xlu1 %341 }
 0x442   :  { %v344_v56 = vmul.f32 %v1268_v49, %v342_v55  ;;  %v298_v57 = vpop.permute.xlu0 %297 }
 0x443   :  { %v300_v58 = vmul.f32 %v1270_v50, %v298_v57 }
 0x444   :  { %346 = vrot.lane.b32.xlu1 %v344_v56, %s1354_s2 }
 0x445   :  { %302 = vrot.lane.b32.xlu0 %v300_v58, %s1354_s2 }
 0x4b6   :  { %v347_v60 = vpop.permute.xlu1 %346 }
 0x4b7   :  { %v1512_v62 = vadd.f32 %v347_v60, %v339_v59  ;;  %v303_v63 = vpop.permute.xlu0 %302 }
 0x4b8   :  { %v1514_v0 = vadd.f32 %v303_v63, %v295_v61 }
 0x4b9   :  { %1271 = vtanh.f32 %v1512_v62 }
 0x4ba   :  { %1273 = vtanh.f32 %v1514_v0 }
 0x4c3   :  { %v1272_v5 = vpop.eup %1271 }
 0x4c4   :  { %v1274_v6 = vpop.eup %1273  ;;  %352 = vrot.lane.b32.xlu1 %v1272_v5, %s1353_s1 }
 0x4c5   :  { %308 = vrot.lane.b32.xlu0 %v1274_v6, %s1353_s1  ;;  %v149_v6 = vadd.f32 %v1416_v7, %v1411_v3 }
 0x536   :  { %v353_v8 = vpop.permute.xlu1 %352 }
 0x537   :  { %v355_v9 = vmul.f32 %v1268_v49, %v353_v8  ;;  %v309_v10 = vpop.permute.xlu0 %308 }
 0x538   :  { %v1529_v11 = vmul.f32 %v1270_v50, %v309_v10 }
 0x539   :  { %357 = vrot.lane.b32.xlu0 %v355_v9, %s1354_s2 }
 0x53a   :  { %361 = vrot.lane.b32.xlu1 %v1529_v11, %s1353_s1 }
 0x5ab   :  { %v358_v16 = vpop.permute.xlu0 %357 }
 0x5ac   :  { %v362_v17 = vpop.permute.xlu1 %361 }
 0x5ad   :  { %v364_v18 = vsel %vm198_vm1, %v358_v16, %v362_v17 }
 0x5ae   :  { %v365_v19 = vpack.c.bf16 %v364_v18, %v364_v18 }
 0x5b0   :  { %1185 = vmatmul.mubr.msk.bf16.vlgmr.msra.gmra.mrb[8].mxu0 %vm241_vm2, %v365_v19 }
 0x5b1   :  { %602 = vmatpush1.bf16.msra.mxu0 %v1433_v21  ;;  %633 = vmatprep.mubr.bf16.mxu0 %v1355_v29 }
 0x5b2   :  { %603 = vmatprep.subr.bf16.mxu0 %v1439_v22 }
 0x5b5   :  { %604 = vmatpush1.bf16.msra.mxu0 %v1446_v23 }
 0x5b6   :  { %605 = vmatprep.subr.bf16.mxu0 %v1453_v24 }
 0x5b9   :  { %606 = vmatpush1.bf16.msra.mxu0 %v1460_v25 }
 0x5ba   :  { %607 = vmatprep.subr.bf16.mxu0 %v1467_v26 }
 0x5bd   :  { %608 = vmatpush1.bf16.msra.mxu0 %v1478_v28 }
 0x5be   :  { %833 = vmatprep.subr.bf16.mxu0 %v1428_v20 }
 0x683   :  { %v403_v30 = vpop.f32.mrb[8].mxu0 }
 0x684   :  { %v446_v31 = vadd.f32 %v403_v30, %v146_v27  ;;  %v405_v32 = vpop.f32.mrb[9].mxu0 }
 0x685   :  { %v410_v33 = vadd.f32 %v1504_v36, %v405_v32  ;;  %v407_v34 = vpop.f32.mrb[10].mxu0 }
 0x686   :  { %v1188_v35 = vmul.f32 -1.442695, %v446_v31  ;;  %v408_v37 = vpop.f32.mrb[11].mxu0 }
 0x687   :  { %v1186_v38 = vmul.f32 -1.442695, %v410_v33 }
 0x688   :  { %1275 = vpow2.f32 %v1188_v35 }
 0x689   :  { %1277 = vpow2.f32 %v1186_v38 }
 0x692   :  { %v1276_v39 = vpop.eup %1275 }
 0x693   :  { %v1278_v40 = vpop.eup %1277  ;;  %v450_v41 = vadd.f32 1.0, %v1276_v39 }
 0x694   :  { %v414_v42 = vadd.f32 1.0, %v1278_v40 }
 0x695   :  { %1279 = vrcp.f32 %v450_v41 }
 0x696   :  { %1281 = vrcp.f32 %v414_v42 }
 0x69f   :  { %v1280_v43 = vpop.eup %1279 }
 0x6a0   :  { %v1282_v44 = vpop.eup %1281  ;;  %v453_v4 = vmul.f32 2.0, %v1280_v43  ;;  %v455_v52 = vmul.f32 %v1280_v43, %v1512_v62 }
 0x6a1   :  { %v417_v45 = vmul.f32 2.0, %v1282_v44  ;;  %v419_v54 = vmul.f32 %v1282_v44, %v1514_v0 }
 0x6a2   :  { %v1189_v46 = vadd.f32 -1.0, %v453_v4 }
 0x6a3   :  { %v1187_v47 = vadd.f32 -1.0, %v417_v45 }
 0x6a4   :  { %457 = vrot.lane.b32.xlu1 %v1189_v46, %s1353_s1 }
 0x6a5   :  { %421 = vrot.lane.b32.xlu0 %v1187_v47, %s1353_s1 }
 0x716   :  { %v458_v48 = vpop.permute.xlu1 %457 }
 0x717   :  { %v460_v49 = vmul.f32 %v1280_v43, %v458_v48  ;;  %v422_v50 = vpop.permute.xlu0 %421 }
 0x718   :  { %v424_v51 = vmul.f32 %v1282_v44, %v422_v50 }
 0x719   :  { %462 = vrot.lane.b32.xlu1 %v460_v49, %s1354_s2 }
 0x71a   :  { %426 = vrot.lane.b32.xlu0 %v424_v51, %s1354_s2 }
 0x78b   :  { %v463_v53 = vpop.permute.xlu1 %462 }
 0x78c   :  { %v465_v55 = vadd.f32 %v463_v53, %v455_v52  ;;  %v427_v56 = vpop.permute.xlu0 %426 }
 0x78d   :  { %v429_v57 = vadd.f32 %v427_v56, %v419_v54 }
 0x78e   :  { %1283 = vtanh.f32 %v465_v55 }
 0x78f   :  { %1285 = vtanh.f32 %v429_v57 }
 0x798   :  { %v1284_v58 = vpop.eup %1283 }
 0x799   :  { %v1286_v59 = vpop.eup %1285  ;;  %468 = vrot.lane.b32.xlu1 %v1284_v58, %s1353_s1 }
 0x79a   :  { %432 = vrot.lane.b32.xlu0 %v1286_v59, %s1353_s1  ;;  %v154_v59 = vadd.f32 %v1411_v3, %v1536_v13 }
 0x80b   :  { %v469_v60 = vpop.permute.xlu1 %468 }
 0x80c   :  { %v471_v61 = vmul.f32 %v1280_v43, %v469_v60  ;;  %v433_v63 = vpop.permute.xlu0 %432 }
 0x80d   :  { %v1564_v1 = vmul.f32 %v1282_v44, %v433_v63 }
 0x80e   :  { %473 = vrot.lane.b32.xlu0 %v471_v61, %s1354_s2 }
 0x80f   :  { %477 = vrot.lane.b32.xlu1 %v1564_v1, %s1353_s1 }
 0x880   :  { %v474_v62 = vpop.permute.xlu0 %473 }
 0x881   :  { %v478_v0 = vpop.permute.xlu1 %477 }
 0x882   :  { %v480_v2 = vsel %vm198_vm1, %v474_v62, %v478_v0 }
 0x883   :  { %v481_v5 = vpack.c.bf16 %v480_v2, %v480_v2 }
 0x885   :  { %1190 = vmatmul.mubr.msk.bf16.vlgmr.msra.gmra.mrb[4].mxu1 %vm241_vm2, %v481_v5 }
 0x886   :  { %718 = vmatpush1.bf16.msra.mxu1 %v1433_v21  ;;  %749 = vmatprep.mubr.bf16.mxu1 %v1355_v29 }
 0x887   :  { %719 = vmatprep.subr.bf16.mxu1 %v1439_v22 }
 0x88a   :  { %720 = vmatpush1.bf16.msra.mxu1 %v1446_v23 }
 0x88b   :  { %721 = vmatprep.subr.bf16.mxu1 %v1453_v24 }
 0x88e   :  { %722 = vmatpush1.bf16.msra.mxu1 %v1460_v25 }
 0x88f   :  { %723 = vmatprep.subr.bf16.mxu1 %v1467_v26 }
 0x892   :  { %724 = vmatpush1.bf16.msra.mxu1 %v1478_v28 }
 0x893   :  { %949 = vmatprep.subr.bf16.mxu1 %v1428_v20 }
 0x958   :  { %v519_v8 = vpop.f32.mrb[4].mxu1 }
 0x959   :  { %v562_v9 = vadd.f32 %v519_v8, %v149_v6  ;;  %v521_v10 = vpop.f32.mrb[5].mxu1 }
 0x95a   :  { %v526_v16 = vadd.f32 %v1504_v36, %v521_v10  ;;  %v523_v17 = vpop.f32.mrb[6].mxu1 }
 0x95b   :  { %v1193_v18 = vmul.f32 -1.442695, %v562_v9  ;;  %v524_v19 = vpop.f32.mrb[7].mxu1 }
 0x95c   :  { %v1191_v27 = vmul.f32 -1.442695, %v526_v16 }
 0x95d   :  { %1287 = vpow2.f32 %v1193_v18 }
 0x95e   :  { %1289 = vpow2.f32 %v1191_v27 }
 0x967   :  { %v1288_v30 = vpop.eup %1287 }
 0x968   :  { %v1290_v31 = vpop.eup %1289  ;;  %v566_v32 = vadd.f32 1.0, %v1288_v30 }
 0x969   :  { %v530_v33 = vadd.f32 1.0, %v1290_v31 }
 0x96a   :  { %1291 = vrcp.f32 %v566_v32 }
 0x96b   :  { %1293 = vrcp.f32 %v530_v33 }
 0x974   :  { %v1292_v34 = vpop.eup %1291 }
 0x975   :  { %v1294_v35 = vpop.eup %1293  ;;  %v569_v7 = vmul.f32 2.0, %v1292_v34  ;;  %v571_v44 = vmul.f32 %v1292_v34, %v465_v55 }
 0x976   :  { %v533_v37 = vmul.f32 2.0, %v1294_v35  ;;  %v535_v45 = vmul.f32 %v1294_v35, %v429_v57 }
 0x977   :  { %v1194_v38 = vadd.f32 -1.0, %v569_v7 }
 0x978   :  { %v1192_v39 = vadd.f32 -1.0, %v533_v37 }
 0x979   :  { %573 = vrot.lane.b32.xlu1 %v1194_v38, %s1353_s1 }
 0x97a   :  { %537 = vrot.lane.b32.xlu0 %v1192_v39, %s1353_s1 }
 0x9eb   :  { %v574_v40 = vpop.permute.xlu1 %573 }
 0x9ec   :  { %v576_v41 = vmul.f32 %v1292_v34, %v574_v40  ;;  %v538_v42 = vpop.permute.xlu0 %537 }
 0x9ed   :  { %v540_v43 = vmul.f32 %v1294_v35, %v538_v42 }
 0x9ee   :  { %578 = vrot.lane.b32.xlu1 %v576_v41, %s1354_s2 }
 0x9ef   :  { %542 = vrot.lane.b32.xlu0 %v540_v43, %s1354_s2 }
 0xa60   :  { %v579_v4 = vpop.permute.xlu1 %578 }
 0xa61   :  { %v581_v46 = vadd.f32 %v579_v4, %v571_v44  ;;  %v543_v47 = vpop.permute.xlu0 %542 }
 0xa62   :  { %v545_v48 = vadd.f32 %v543_v47, %v535_v45 }
 0xa63   :  { %1295 = vtanh.f32 %v581_v46 }
 0xa64   :  { %1297 = vtanh.f32 %v545_v48 }
 0xa6d   :  { %v1296_v49 = vpop.eup %1295 }
 0xa6e   :  { %v1298_v50 = vpop.eup %1297  ;;  %584 = vrot.lane.b32.xlu1 %v1296_v49, %s1353_s1  ;;  %v157_v49 = vadd.f32 %v1411_v3, %v1540_v15 }
 0xa6f   :  { %548 = vrot.lane.b32.xlu0 %v1298_v50, %s1353_s1 }
 0xae0   :  { %v585_v51 = vpop.permute.xlu1 %584 }
 0xae1   :  { %v587_v52 = vmul.f32 %v1292_v34, %v585_v51  ;;  %v549_v53 = vpop.permute.xlu0 %548 }
 0xae2   :  { %v1589_v54 = vmul.f32 %v1294_v35, %v549_v53 }
 0xae3   :  { %589 = vrot.lane.b32.xlu0 %v587_v52, %s1354_s2 }
 0xae4   :  { %593 = vrot.lane.b32.xlu1 %v1589_v54, %s1353_s1 }
 0xb55   :  { %v590_v55 = vpop.permute.xlu0 %589 }
 0xb56   :  { %v594_v56 = vpop.permute.xlu1 %593 }
 0xb57   :  { %v596_v57 = vsel %vm198_vm1, %v590_v55, %v594_v56 }
 0xb58   :  { %v597_v58 = vpack.c.bf16 %v596_v57, %v596_v57 }
 0xb5a   :  { %1195 = vmatmul.mubr.msk.bf16.vlgmr.msra.gmra.mrb[12].mxu0 %vm241_vm2, %v597_v58 }
 0xb5b   :  { %834 = vmatpush1.bf16.msra.mxu0 %v1433_v21  ;;  %865 = vmatprep.mubr.bf16.mxu0 %v1355_v29 }
 0xb5c   :  { %835 = vmatprep.subr.bf16.mxu0 %v1439_v22 }
 0xb5f   :  { %836 = vmatpush1.bf16.msra.mxu0 %v1446_v23 }
 0xb60   :  { %837 = vmatprep.subr.bf16.mxu0 %v1453_v24 }
 0xb63   :  { %838 = vmatpush1.bf16.msra.mxu0 %v1460_v25 }
 0xb64   :  { %839 = vmatprep.subr.bf16.mxu0 %v1467_v26 }
 0xb67   :  { %840 = vmatpush1.bf16.msra.mxu0 %v1478_v28 }
 0xb68   :  { %1065 = vmatprep.subr.bf16.mxu0 %v1428_v20 }
 0xc2d   :  { %v635_v60 = vpop.f32.mrb[12].mxu0 }
 0xc2e   :  { %v678_v61 = vadd.f32 %v635_v60, %v154_v59  ;;  %v637_v63 = vpop.f32.mrb[13].mxu0 }
 0xc2f   :  { %v642_v62 = vadd.f32 %v1504_v36, %v637_v63  ;;  %v639_v0 = vpop.f32.mrb[14].mxu0 }
 0xc30   :  { %v1198_v2 = vmul.f32 -1.442695, %v678_v61  ;;  %v640_v5 = vpop.f32.mrb[15].mxu0 }
 0xc31   :  { %v1196_v6 = vmul.f32 -1.442695, %v642_v62 }
 0xc32   :  { %1299 = vpow2.f32 %v1198_v2 }
 0xc33   :  { %1301 = vpow2.f32 %v1196_v6 }
 0xc3c   :  { %v1300_v8 = vpop.eup %1299 }
 0xc3d   :  { %v1302_v9 = vpop.eup %1301  ;;  %v682_v10 = vadd.f32 1.0, %v1300_v8 }
 0xc3e   :  { %v646_v16 = vadd.f32 1.0, %v1302_v9 }
 0xc3f   :  { %1303 = vrcp.f32 %v682_v10 }
 0xc40   :  { %1305 = vrcp.f32 %v646_v16 }
 0xc49   :  { %v1304_v20 = vpop.eup %1303 }
 0xc4a   :  { %v1306_v17 = vpop.eup %1305  ;;  %v685_v13 = vmul.f32 2.0, %v1304_v20  ;;  %v687_v34 = vmul.f32 %v1304_v20, %v581_v46 }
 0xc4b   :  { %v649_v18 = vmul.f32 2.0, %v1306_v17  ;;  %v651_v7 = vmul.f32 %v1306_v17, %v545_v48 }
 0xc4c   :  { %v1199_v19 = vadd.f32 -1.0, %v685_v13 }
 0xc4d   :  { %v1197_v27 = vadd.f32 -1.0, %v649_v18 }
 0xc4e   :  { %689 = vrot.lane.b32.xlu1 %v1199_v19, %s1353_s1 }
 0xc4f   :  { %653 = vrot.lane.b32.xlu0 %v1197_v27, %s1353_s1 }
 0xcc0   :  { %v690_v30 = vpop.permute.xlu1 %689 }
 0xcc1   :  { %v692_v31 = vmul.f32 %v1304_v20, %v690_v30  ;;  %v654_v32 = vpop.permute.xlu0 %653 }
 0xcc2   :  { %v656_v33 = vmul.f32 %v1306_v17, %v654_v32 }
 0xcc3   :  { %694 = vrot.lane.b32.xlu1 %v692_v31, %s1354_s2 }
 0xcc4   :  { %658 = vrot.lane.b32.xlu0 %v656_v33, %s1354_s2 }
 0xd35   :  { %v695_v35 = vpop.permute.xlu1 %694 }
 0xd36   :  { %v697_v37 = vadd.f32 %v695_v35, %v687_v34  ;;  %v659_v38 = vpop.permute.xlu0 %658 }
 0xd37   :  { %v661_v39 = vadd.f32 %v659_v38, %v651_v7 }
 0xd38   :  { %1307 = vtanh.f32 %v697_v37 }
 0xd39   :  { %1309 = vtanh.f32 %v661_v39 }
 0xd42   :  { %v1308_v40 = vpop.eup %1307 }
 0xd43   :  { %v1310_v41 = vpop.eup %1309  ;;  %700 = vrot.lane.b32.xlu1 %v1308_v40, %s1353_s1  ;;  %v162_v40 = vadd.f32 %v1534_v12, %v1411_v3 }
 0xd44   :  { %664 = vrot.lane.b32.xlu0 %v1310_v41, %s1353_s1 }
 0xdb5   :  { %v701_v42 = vpop.permute.xlu1 %700 }
 0xdb6   :  { %v703_v43 = vmul.f32 %v1304_v20, %v701_v42  ;;  %v665_v44 = vpop.permute.xlu0 %664 }
 0xdb7   :  { %v1614_v4 = vmul.f32 %v1306_v17, %v665_v44 }
 0xdb8   :  { %705 = vrot.lane.b32.xlu0 %v703_v43, %s1354_s2 }
 0xdb9   :  { %709 = vrot.lane.b32.xlu1 %v1614_v4, %s1353_s1 }
 0xe2a   :  { %v706_v45 = vpop.permute.xlu0 %705 }
 0xe2b   :  { %v710_v46 = vpop.permute.xlu1 %709 }
 0xe2c   :  { %v712_v47 = vsel %vm198_vm1, %v706_v45, %v710_v46 }
 0xe2d   :  { %v713_v48 = vpack.c.bf16 %v712_v47, %v712_v47 }
 0xe2f   :  { %1200 = vmatmul.mubr.msk.bf16.vlgmr.msra.gmra.mrb[8].mxu1 %vm241_vm2, %v713_v48 }
 0xe30   :  { %950 = vmatpush1.bf16.msra.mxu1 %v1433_v21  ;;  %981 = vmatprep.mubr.bf16.mxu1 %v1355_v29 }
 0xe31   :  { %951 = vmatprep.subr.bf16.mxu1 %v1439_v22 }
 0xe34   :  { %952 = vmatpush1.bf16.msra.mxu1 %v1446_v23 }
 0xe35   :  { %953 = vmatprep.subr.bf16.mxu1 %v1453_v24 }
 0xe38   :  { %954 = vmatpush1.bf16.msra.mxu1 %v1460_v25 }
 0xe39   :  { %955 = vmatprep.subr.bf16.mxu1 %v1467_v26 }
 0xe3c   :  { %956 = vmatpush1.bf16.msra.mxu1 %v1478_v28 }
 0xf02   :  { %v751_v50 = vpop.f32.mrb[8].mxu1 }
 0xf03   :  { %v794_v51 = vadd.f32 %v751_v50, %v157_v49  ;;  %v753_v52 = vpop.f32.mrb[9].mxu1 }
 0xf04   :  { %v758_v53 = vadd.f32 %v1504_v36, %v753_v52  ;;  %v755_v55 = vpop.f32.mrb[10].mxu1 }
 0xf05   :  { %v1203_v56 = vmul.f32 -1.442695, %v794_v51  ;;  %v756_v57 = vpop.f32.mrb[11].mxu1 }
 0xf06   :  { %v1201_v58 = vmul.f32 -1.442695, %v758_v53 }
 0xf07   :  { %1311 = vpow2.f32 %v1203_v56 }
 0xf08   :  { %1313 = vpow2.f32 %v1201_v58 }
 0xf11   :  { %v1312_v59 = vpop.eup %1311 }
 0xf12   :  { %v1314_v60 = vpop.eup %1313  ;;  %v798_v61 = vadd.f32 1.0, %v1312_v59 }
 0xf13   :  { %v762_v63 = vadd.f32 1.0, %v1314_v60 }
 0xf14   :  { %1315 = vrcp.f32 %v798_v61 }
 0xf15   :  { %1317 = vrcp.f32 %v762_v63 }
 0xf1e   :  { %v1316_v62 = vpop.eup %1315 }
 0xf1f   :  { %v1318_v0 = vpop.eup %1317  ;;  %v801_v15 = vmul.f32 2.0, %v1316_v62  ;;  %v803_v20 = vmul.f32 %v1316_v62, %v697_v37 }
 0xf20   :  { %v765_v2 = vmul.f32 2.0, %v1318_v0  ;;  %v767_v13 = vmul.f32 %v1318_v0, %v661_v39 }
 0xf21   :  { %v1204_v5 = vadd.f32 -1.0, %v801_v15 }
 0xf22   :  { %v1202_v6 = vadd.f32 -1.0, %v765_v2 }
 0xf23   :  { %805 = vrot.lane.b32.xlu1 %v1204_v5, %s1353_s1 }
 0xf24   :  { %769 = vrot.lane.b32.xlu0 %v1202_v6, %s1353_s1 }
 0xf95   :  { %v806_v8 = vpop.permute.xlu1 %805 }
 0xf96   :  { %v808_v9 = vmul.f32 %v1316_v62, %v806_v8  ;;  %v770_v10 = vpop.permute.xlu0 %769 }
 0xf97   :  { %v772_v16 = vmul.f32 %v1318_v0, %v770_v10  ;;  %v165_v10 = vadd.f32 %v1538_v14, %v1411_v3 }
 0xf98   :  { %810 = vrot.lane.b32.xlu1 %v808_v9, %s1354_s2 }
 0xf99   :  { %774 = vrot.lane.b32.xlu0 %v772_v16, %s1354_s2 }
0x100a   :  { %v811_v17 = vpop.permute.xlu1 %810 }
0x100b   :  { %v813_v18 = vadd.f32 %v811_v17, %v803_v20  ;;  %v775_v19 = vpop.permute.xlu0 %774 }
0x100c   :  { %v777_v27 = vadd.f32 %v775_v19, %v767_v13 }
0x100d   :  { %1319 = vtanh.f32 %v813_v18 }
0x100e   :  { %1321 = vtanh.f32 %v777_v27 }
0x1017   :  { %v1320_v30 = vpop.eup %1319 }
0x1018   :  { %v1322_v31 = vpop.eup %1321  ;;  %816 = vrot.lane.b32.xlu1 %v1320_v30, %s1353_s1 }
0x1019   :  { %780 = vrot.lane.b32.xlu0 %v1322_v31, %s1353_s1 }
0x108a   :  { %v817_v32 = vpop.permute.xlu1 %816 }
0x108b   :  { %v819_v33 = vmul.f32 %v1316_v62, %v817_v32  ;;  %v781_v34 = vpop.permute.xlu0 %780 }
0x108c   :  { %v1638_v35 = vmul.f32 %v1318_v0, %v781_v34 }
0x108d   :  { %821 = vrot.lane.b32.xlu0 %v819_v33, %s1354_s2 }
0x108e   :  { %825 = vrot.lane.b32.xlu1 %v1638_v35, %s1353_s1 }
0x10ff   :  { %v822_v7 = vpop.permute.xlu0 %821 }
0x1100   :  { %v826_v37 = vpop.permute.xlu1 %825 }
0x1101   :  { %v828_v38 = vsel %vm198_vm1, %v822_v7, %v826_v37 }
0x1102   :  { %v829_v39 = vpack.c.bf16 %v828_v38, %v828_v38 }
0x1104   :  { %1205 = vmatmul.mubr.msk.bf16.vlgmr.msra.gmra.mrb[16].mxu0 %vm241_vm2, %v829_v39 }
0x1105   :  { %1066 = vmatpush1.bf16.msra.mxu0 %v1433_v21  ;;  %1097 = vmatprep.mubr.bf16.mxu0 %v1355_v29 }
0x1106   :  { %1067 = vmatprep.subr.bf16.mxu0 %v1439_v22 }
0x1109   :  { %1068 = vmatpush1.bf16.msra.mxu0 %v1446_v23 }
0x110a   :  { %1069 = vmatprep.subr.bf16.mxu0 %v1453_v24 }
0x110d   :  { %1070 = vmatpush1.bf16.msra.mxu0 %v1460_v25 }
0x110e   :  { %1071 = vmatprep.subr.bf16.mxu0 %v1467_v26 }
0x1111   :  { %1072 = vmatpush1.bf16.msra.mxu0 %v1478_v28 }
0x11d7   :  { %v867_v41 = vpop.f32.mrb[16].mxu0 }
0x11d8   :  { %v910_v42 = vadd.f32 %v867_v41, %v162_v40  ;;  %v869_v21 = vpop.f32.mrb[17].mxu0 }
0x11d9   :  { %v874_v29 = vadd.f32 %v1504_v36, %v869_v21  ;;  %v871_v43 = vpop.f32.mrb[18].mxu0 }
0x11da   :  { %v1208_v22 = vmul.f32 -1.442695, %v910_v42  ;;  %v872_v44 = vpop.f32.mrb[19].mxu0 }
0x11db   :  { %v1206_v23 = vmul.f32 -1.442695, %v874_v29 }
0x11dc   :  { %1323 = vpow2.f32 %v1208_v22 }
0x11dd   :  { %1325 = vpow2.f32 %v1206_v23 }
0x11e6   :  { %v1324_v24 = vpop.eup %1323 }
0x11e7   :  { %v1326_v25 = vpop.eup %1325  ;;  %v914_v45 = vadd.f32 1.0, %v1324_v24 }
0x11e8   :  { %v878_v26 = vadd.f32 1.0, %v1326_v25 }
0x11e9   :  { %1327 = vrcp.f32 %v914_v45 }
0x11ea   :  { %1329 = vrcp.f32 %v878_v26 }
0x11f3   :  { %v1328_v28 = vpop.eup %1327 }
0x11f4   :  { %v1330_v46 = vpop.eup %1329  ;;  %v917_v12 = vmul.f32 2.0, %v1328_v28  ;;  %v919_v55 = vmul.f32 %v1328_v28, %v813_v18 }
0x11f5   :  { %v881_v47 = vmul.f32 2.0, %v1330_v46  ;;  %v883_v57 = vmul.f32 %v1330_v46, %v777_v27 }
0x11f6   :  { %v1209_v48 = vadd.f32 -1.0, %v917_v12 }
0x11f7   :  { %v1207_v49 = vadd.f32 -1.0, %v881_v47 }
0x11f8   :  { %921 = vrot.lane.b32.xlu1 %v1209_v48, %s1353_s1 }
0x11f9   :  { %885 = vrot.lane.b32.xlu0 %v1207_v49, %s1353_s1 }
0x126a   :  { %v922_v50 = vpop.permute.xlu1 %921 }
0x126b   :  { %v924_v51 = vmul.f32 %v1328_v28, %v922_v50  ;;  %v886_v52 = vpop.permute.xlu0 %885 }
0x126c   :  { %v888_v53 = vmul.f32 %v1330_v46, %v886_v52 }
0x126d   :  { %926 = vrot.lane.b32.xlu1 %v924_v51, %s1354_s2 }
0x126e   :  { %890 = vrot.lane.b32.xlu0 %v888_v53, %s1354_s2 }
0x12df   :  { %v927_v56 = vpop.permute.xlu1 %926 }
0x12e0   :  { %v929_v58 = vadd.f32 %v927_v56, %v919_v55  ;;  %v891_v59 = vpop.permute.xlu0 %890 }
0x12e1   :  { %v893_v60 = vadd.f32 %v891_v59, %v883_v57 }
0x12e2   :  { %1331 = vtanh.f32 %v929_v58 }
0x12e3   :  { %1333 = vtanh.f32 %v893_v60 }
0x12ec   :  { %v1332_v61 = vpop.eup %1331 }
0x12ed   :  { %v1334_v63 = vpop.eup %1333  ;;  %932 = vrot.lane.b32.xlu1 %v1332_v61, %s1353_s1 }
0x12ee   :  { %896 = vrot.lane.b32.xlu0 %v1334_v63, %s1353_s1 }
0x135f   :  { %v933_v62 = vpop.permute.xlu1 %932 }
0x1360   :  { %v935_v0 = vmul.f32 %v1328_v28, %v933_v62  ;;  %v897_v15 = vpop.permute.xlu0 %896  ;;  %v1182_v62 = vld [vmem:[%s1726_s5] ss:$0 sm:$0xff] }
0x1361   :  { %v1662_v2 = vmul.f32 %v1330_v46, %v897_v15 }
0x1362   :  { %937 = vrot.lane.b32.xlu0 %v935_v0, %s1354_s2 }
0x1363   :  { %941 = vrot.lane.b32.xlu1 %v1662_v2, %s1353_s1 }
0x13d4   :  { %v938_v5 = vpop.permute.xlu0 %937 }
0x13d5   :  { %v942_v6 = vpop.permute.xlu1 %941 }
0x13d6   :  { %v944_v8 = vsel %vm198_vm1, %v938_v5, %v942_v6 }
0x13d7   :  { %v945_v9 = vpack.c.bf16 %v944_v8, %v944_v8 }
0x13d9   :  { %1210 = vmatmul.mubr.msk.bf16.vlgmr.msra.gmra.mrb[12].mxu1 %vm241_vm2, %v945_v9 }
0x14ac   :  { %v983_v16 = vpop.f32.mrb[12].mxu1 }
0x14ad   :  { %v1026_v20 = vadd.f32 %v983_v16, %v165_v10  ;;  %v985_v17 = vpop.f32.mrb[13].mxu1 }
0x14ae   :  { %v990_v13 = vadd.f32 %v1504_v36, %v985_v17  ;;  %v987_v18 = vpop.f32.mrb[14].mxu1 }
0x14af   :  { %v1213_v19 = vmul.f32 -1.442695, %v1026_v20  ;;  %v988_v27 = vpop.f32.mrb[15].mxu1 }
0x14b0   :  { %v1211_v30 = vmul.f32 -1.442695, %v990_v13 }
0x14b1   :  { %1335 = vpow2.f32 %v1213_v19  ;;  %v45_v19 = vlaneseq }
0x14b2   :  { %1337 = vpow2.f32 %v1211_v30 }
0x14b3   :  { %v46_v27 = vand.u32 127, %v45_v19 }
0x14b5   :  { %vm328_vm3 = vcmp.eq.s32.totalorder %v46_v27, 0  ;;  %vm444_vm4 = vcmp.eq.s32.totalorder %v46_v27, 1  ;;  %vm560_vm5 = vcmp.eq.s32.totalorder %v46_v27, 2  ;;  %vm676_vm6 = vcmp.eq.s32.totalorder %v46_v27, 3 }
0x14b6   :  { %vm792_vm7 = vcmp.eq.s32.totalorder %v46_v27, 4  ;;  %vm908_vm8 = vcmp.eq.s32.totalorder %v46_v27, 5  ;;  %vm1024_vm9 = vcmp.eq.s32.totalorder %v46_v27, 6  ;;  %vm1139_vm10 = vcmp.eq.s32.totalorder %v46_v27, 7 }
0x14bb   :  { %v1336_v31 = vpop.eup %1335 }
0x14bc   :  { %v1338_v32 = vpop.eup %1337  ;;  %v1030_v33 = vadd.f32 1.0, %v1336_v31 }
0x14bd   :  { %v994_v34 = vadd.f32 1.0, %v1338_v32 }
0x14be   :  { %1339 = vrcp.f32 %v1030_v33 }
0x14bf   :  { %1341 = vrcp.f32 %v994_v34 }
0x14c8   :  { %v1340_v7 = vpop.eup %1339 }
0x14c9   :  { %v1342_v37 = vpop.eup %1341  ;;  %v1033_v3 = vmul.f32 2.0, %v1340_v7  ;;  %v1035_v29 = vmul.f32 %v1340_v7, %v929_v58 }
0x14ca   :  { %v997_v14 = vmul.f32 2.0, %v1342_v37  ;;  %v999_v22 = vmul.f32 %v1342_v37, %v893_v60 }
0x14cb   :  { %v1214_v38 = vadd.f32 -1.0, %v1033_v3 }
0x14cc   :  { %v1212_v39 = vadd.f32 -1.0, %v997_v14 }
0x14cd   :  { %1037 = vrot.lane.b32.xlu1 %v1214_v38, %s1353_s1 }
0x14ce   :  { %1001 = vrot.lane.b32.xlu0 %v1212_v39, %s1353_s1 }
0x153f   :  { %v1038_v40 = vpop.permute.xlu1 %1037 }
0x1540   :  { %v1040_v41 = vmul.f32 %v1340_v7, %v1038_v40  ;;  %v1002_v42 = vpop.permute.xlu0 %1001 }
0x1541   :  { %v1004_v21 = vmul.f32 %v1342_v37, %v1002_v42 }
0x1542   :  { %1042 = vrot.lane.b32.xlu1 %v1040_v41, %s1354_s2  ;;  %v12_v41 = vstv %s1727_s6 }
0x1543   :  { %1006 = vrot.lane.b32.xlu0 %v1004_v21, %s1354_s2  ;;  %13 = vst [vmem:[#allocation2] sm:$0x1] %v12_v41 }
0x15b4   :  { %v1043_v43 = vpop.permute.xlu1 %1042 }
0x15b5   :  { %v1045_v44 = vadd.f32 %v1043_v43, %v1035_v29  ;;  %v1007_v23 = vpop.permute.xlu0 %1006 }
0x15b6   :  { %v1009_v24 = vadd.f32 %v1007_v23, %v999_v22 }
0x15b7   :  { %1343 = vtanh.f32 %v1045_v44 }
0x15b8   :  { %1345 = vtanh.f32 %v1009_v24 }
0x15c1   :  { %v1344_v25 = vpop.eup %1343 }
0x15c2   :  { %v1346_v45 = vpop.eup %1345  ;;  %1048 = vrot.lane.b32.xlu1 %v1344_v25, %s1353_s1 }
0x15c3   :  { %1012 = vrot.lane.b32.xlu0 %v1346_v45, %s1353_s1 }
0x1634   :  { %v1049_v26 = vpop.permute.xlu1 %1048 }
0x1635   :  { %v1051_v28 = vmul.f32 %v1340_v7, %v1049_v26  ;;  %v1013_v46 = vpop.permute.xlu0 %1012  ;;  %v1218_v26 = vld [vmem:[#allocation2] ss:$0 sm:$0xff] }
0x1636   :  { %v1678_v12 = vmul.f32 %v1342_v37, %v1013_v46 }
0x1637   :  { %1053 = vrot.lane.b32.xlu0 %v1051_v28, %s1354_s2 }
0x1638   :  { %1057 = vrot.lane.b32.xlu1 %v1678_v12, %s1353_s1 }
0x16a9   :  { %v1054_v47 = vpop.permute.xlu0 %1053 }
0x16aa   :  { %v1058_v48 = vpop.permute.xlu1 %1057 }
0x16ab   :  { %v1060_v49 = vsel %vm198_vm1, %v1054_v47, %v1058_v48 }
0x16ac   :  { %v1061_v50 = vpack.c.bf16 %v1060_v49, %v1060_v49 }
0x16ae   :  { %1215 = vmatmul.mubr.msk.bf16.vlgmr.msra.gmra.mrb[20].mxu0 %vm241_vm2, %v1061_v50 }
0x1781   :  { %v1099_v51 = vpop.f32.mrb[20].mxu0 }
0x1782   :  { %v1100_v52 = vpop.f32.mrb[21].mxu0 }
0x1783   :  { %v1105_v53 = vadd.f32 %v1504_v36, %v1100_v52  ;;  %v1102_v55 = vpop.f32.mrb[22].mxu0 }
0x1784   :  { %v1103_v56 = vpop.f32.mrb[23].mxu0 }
0x1785   :  { %v1216_v57 = vmul.f32 -1.442695, %v1105_v53 }
0x1787   :  { %1347 = vpow2.f32 %v1216_v57 }
0x1791   :  { %v1348_v58 = vpop.eup %1347 }
0x1792   :  { %v1109_v59 = vadd.f32 1.0, %v1348_v58 }
0x1794   :  { %1349 = vrcp.f32 %v1109_v59 }
0x179e   :  { %v1350_v60 = vpop.eup %1349 }
0x179f   :  { %v1112_v61 = vmul.f32 2.0, %v1350_v60  ;;  %v1114_v17 = vmul.f32 %v1350_v60, %v1009_v24 }
0x17a1   :  { %v1217_v63 = vadd.f32 -1.0, %v1112_v61 }
0x17a3   :  { %1116 = vrot.lane.b32.xlu0 %v1217_v63, %s1353_s1 }
0x17a7   :  { %317 = vrot.lane.b32.xlu0 %v1182_v62, %s1356_s30 }
0x1815   :  { %v1117_v0 = vpop.permute.xlu0 %1116 }
0x1816   :  { %v1119_v36 = vmul.f32 %v1350_v60, %v1117_v0 }
0x1818   :  { %1121 = vrot.lane.b32.xlu1 %v1119_v36, %s1354_s2 }
0x1819   :  { %v318_v15 = vpop.permute.xlu0 %317 }
0x181a   :  { %v320_v5 = vmul.f32 %v318_v15, %v1529_v11  ;;  %v436_v6 = vmul.f32 %v1564_v1, %v318_v15  ;;  %v552_v11 = vmul.f32 %v1589_v54, %v318_v15  ;;  %v668_v1 = vmul.f32 %v1614_v4, %v318_v15 }
0x181b   :  { %v900_v4 = vmul.f32 %v1662_v2, %v318_v15  ;;  %v784_v3 = vmul.f32 %v1638_v35, %v318_v15  ;;  %v1016_v39 = vmul.f32 %v1678_v12, %v318_v15 }
0x181c   :  { %322 = vrot.lane.b32.xlu1 %v320_v5, %s1354_s2 }
0x1820   :  { %438 = vrot.lane.b32.xlu1 %v436_v6, %s1354_s2 }
0x188a   :  { %v1122_v8 = vpop.permute.xlu1 %1121 }
0x188b   :  { %v1124_v13 = vadd.f32 %v1122_v8, %v1114_v17 }
0x188d   :  { %1351 = vtanh.f32 %v1124_v13 }
0x188e   :  { %v323_v9 = vpop.permute.xlu1 %322 }
0x188f   :  { %v325_v10 = vsel %vm198_vm1, %v323_v9, 0.0 }
0x1890   :  { %326 = vadd.xlane.f32.xlu0 %v325_v10 }
0x1892   :  { %v439_v16 = vpop.permute.xlu1 %438 }
0x1893   :  { %v441_v20 = vsel %vm198_vm1, %v439_v16, 0.0 }
0x1894   :  { %442 = vadd.xlane.f32.xlu1 %v441_v20 }
0x1897   :  { %v1352_v18 = vpop.eup %1351 }
0x18a5   :  { %554 = vrot.lane.b32.xlu1 %v552_v11, %s1354_s2 }
0x18a6   :  { %1127 = vrot.lane.b32.xlu0 %v1352_v18, %s1353_s1 }
0x18a9   :  { %670 = vrot.lane.b32.xlu1 %v668_v1, %s1354_s2 }
0x191d   :  { %v327_v30 = vpop.xlane.xlu0 %326 }
0x191e   :  { %v329_v31 = vsel %vm328_vm3, %v327_v30, 0.0 }
0x1921   :  { %v443_v32 = vpop.xlane.xlu1 %442  ;;  %v1128_v14 = vpop.permute.xlu0 %1127 }
0x1922   :  { %v445_v33 = vsel %vm444_vm4, %v443_v32, %v329_v31  ;;  %v1130_v38 = vmul.f32 %v1350_v60, %v1128_v14 }
0x1924   :  { %v1131_v40 = vmul.f32 %v1130_v38, %v318_v15 }
0x1925   :  { %v555_v34 = vpop.permute.xlu1 %554 }
0x1926   :  { %v557_v54 = vsel %vm198_vm1, %v555_v34, 0.0 }
0x1927   :  { %558 = vadd.xlane.f32.xlu0 %v557_v54 }
0x1929   :  { %v671_v7 = vpop.permute.xlu1 %670 }
0x192a   :  { %v673_v37 = vsel %vm198_vm1, %v671_v7, 0.0 }
0x192b   :  { %674 = vadd.xlane.f32.xlu1 %v673_v37 }
0x193c   :  { %902 = vrot.lane.b32.xlu1 %v900_v4, %s1354_s2 }
0x193d   :  { %786 = vrot.lane.b32.xlu0 %v784_v3, %s1354_s2 }
0x1941   :  { %1018 = vrot.lane.b32.xlu0 %v1016_v39, %s1354_s2 }
0x1945   :  { %1133 = vrot.lane.b32.xlu0 %v1131_v40, %s1354_s2 }
0x19b4   :  { %v559_v35 = vpop.xlane.xlu0 %558 }
0x19b5   :  { %v561_v2 = vsel %vm560_vm5, %v559_v35, %v445_v33 }
0x19b8   :  { %v787_v42 = vpop.permute.xlu0 %786  ;;  %v675_v21 = vpop.xlane.xlu1 %674 }
0x19b9   :  { %v677_v29 = vsel %vm676_vm6, %v675_v21, %v561_v2  ;;  %v789_v43 = vsel %vm198_vm1, %v787_v42, 0.0 }
0x19ba   :  { %790 = vadd.xlane.f32.xlu0 %v789_v43 }
0x19bc   :  { %v1019_v22 = vpop.permute.xlu0 %1018  ;;  %v903_v44 = vpop.permute.xlu1 %902 }
0x19bd   :  { %v1021_v23 = vsel %vm198_vm1, %v1019_v22, 0.0  ;;  %v905_v24 = vsel %vm198_vm1, %v903_v44, 0.0 }
0x19be   :  { %1022 = vadd.xlane.f32.xlu0 %v1021_v23  ;;  %906 = vadd.xlane.f32.xlu1 %v905_v24 }
0x19c0   :  { %v1134_v25 = vpop.permute.xlu0 %1133 }
0x19c1   :  { %v1136_v45 = vsel %vm198_vm1, %v1134_v25, 0.0 }
0x19c2   :  { %1137 = vadd.xlane.f32.xlu0 %v1136_v45 }
0x19cf   :  { %1148 = vperm.xlu1 %1238, %v1218_v26  }
0x1a47   :  { %v791_v28 = vpop.xlane.xlu0 %790 }
0x1a48   :  { %v793_v46 = vsel %vm792_vm7, %v791_v28, %v677_v29 }
0x1a4b   :  { %v1023_v12 = vpop.xlane.xlu0 %1022  ;;  %v907_v47 = vpop.xlane.xlu1 %906 }
0x1a4c   :  { %v909_v48 = vsel %vm908_vm8, %v907_v47, %v793_v46 }
0x1a4d   :  { %v1025_v50 = vsel %vm1024_vm9, %v1023_v12, %v909_v48 }
0x1a4f   :  { %v1138_v49 = vpop.xlane.xlu0 %1137  ;;  %v1149_v51 = vpop.permute.xlu1 %1148 }
0x1a50   :  { %v1140_v52 = vsel %vm1139_vm10, %v1138_v49, %v1025_v50 }
0x1a51   :  { %v1151_v53 = vadd.f32 %v1149_v51, %v1140_v52 }
0x1a53   :  { %1153 = vst.msk [vmem:[%s1728_s7] sm:$0xff] %vm1152_vm11, %v1151_v53 }

</bundles_post_ra>
